<compile_context>
chip_gen: v6e
topology: v6e:2x2x1
jax: 0.10.0
libtpu: 0.0.40
codegen_flags: <defaults>
</compile_context>

<pallas_src>
import functools

import jax
import jax.numpy as jnp
from jax.experimental import pallas as pl
from jax.experimental.pallas import tpu as pltpu


_CHANNELS = [(1, 16), (16, 32), (32, 64), (64, 128)]
_SPATIAL = [32, 16, 8, 4]          # input spatial size of each conv layer
_BN_EPS = 0.8                      # BatchNorm2d(C, 0.8): 0.8 is eps


# ------------------------------ Pallas kernel ------------------------------ #

def _discriminator_kernel(
        x_ref,                       # (16*bt, 128) bf16  layer-1 im2row windows
        w1, b1,                      # (128, 256) bf16, (1, 256) f32
        w2, b2, s2, t2,              # (768, 256) bf16, (1, 256) f32 x3
        w3, b3, s3, t3,
        w4, b4, s4, t4,
        wl, bl,                      # (2, 256) f32, (1, 1) f32
        o_ref,                       # (bt, 1) f32
        wb2, wb3, wb4):              # (8bt,768) (4bt,768) (2bt,768) f32 scratch
    bt = o_ref.shape[0]

    def conv(lhs_bf16, w_ref, b_ref, s_ref=None, t_ref=None):
        # one MXU GEMM (bf16 x bf16 -> f32) + f32 VPU epilogue
        acc = jnp.dot(lhs_bf16, w_ref[...], preferred_element_type=jnp.float32)
        y = acc + b_ref[...]                       # conv bias
        y = jnp.where(y >= 0.0, y, 0.2 * y)        # LeakyReLU(0.2)
        # Dropout2d(0.25): identity in eval mode.
        if s_ref is not None:                      # BatchNorm (eval, affine-folded)
            y = y * s_ref[...] + t_ref[...]
        return y                                   # (n_rows*bt, 256) f32

    def scatter(y, wb_next, n_rows):
        """Scatter this layer's output rows (y: (n_rows*bt, 256)) into the
        next layer's im2row window buffer ((n_rows//2)*bt, 768).
        Window j holds [padded row 2j | 2j+1 | 2j+2] along lanes; data row d
        is padded row d+1.  All stores are lane-aligned, full-sublane-extent
        f32 stores with static indices."""
        # vertical zero padding: only window 0 / tap kh=0 ever reads the pad
        wb_next[0:bt, 0:256] = jnp.zeros((bt, 256), wb_next.dtype)
        for d in range(n_rows):
            row = y[d * bt:(d + 1) * bt, :]
            if d % 2 == 0:                                   # padded row odd
                j = d // 2
                wb_next[j * bt:(j + 1) * bt, 256:512] = row        # kh=1 slot
            else:                                            # padded row even
                j = (d - 1) // 2
                wb_next[j * bt:(j + 1) * bt, 512:768] = row        # kh=2 slot
                if d < n_rows - 1:
                    j2 = (d + 1) // 2
                    wb_next[j2 * bt:(j2 + 1) * bt, 0:256] = row    # kh=0 slot

    # Layer 1: 32x32x1 -> 16x16x16   (no BatchNorm)
    scatter(conv(x_ref[...], w1, b1), wb2, 16)
    # Layer 2: 16x16x16 -> 8x8x32
    scatter(conv(wb2[...].astype(jnp.bfloat16), w2, b2, s2, t2), wb3, 8)
    # Layer 3: 8x8x32 -> 4x4x64
    scatter(conv(wb3[...].astype(jnp.bfloat16), w3, b3, s3, t3), wb4, 4)
    # Layer 4: 4x4x64 -> 2x2x128, fused with the Linear(512,1)+Sigmoid head
    y4 = conv(wb4[...].astype(jnp.bfloat16), w4, b4, s4, t4)     # (2*bt, 256)
    h = y4[0:bt, :] * wl[0:1, :] + y4[bt:2 * bt, :] * wl[1:2, :]
    z = jnp.sum(h, axis=1, keepdims=True) + bl[...]              # (bt, 1)
    o_ref[...] = 1.0 / (1.0 + jnp.exp(-z))                       # exact sigmoid


# ----------------------------- parameter prep ------------------------------ #

def _build_window_gemm_weight(wconv, w_in):
    """Fold the kw taps, stride-2 width subsampling and left/right zero
    padding of a 3x3 / stride-2 / pad-1 conv into one dense GEMM weight
        (3 * w_in * cin, (w_in // 2) * cout)
    K index = kh*(w_in*cin) + w*cin + ci   (matches the im2row window layout)
    N index = o*cout + co.
    wconv: (3, 3, cin, cout) in (kh, kw, ci, co) order."""
    _, _, cin, cout = wconv.shape
    wo = w_in // 2
    o_idx = jnp.arange(wo)
    per_kh = []
    for kh in range(3):
        m = jnp.zeros((w_in, cin, wo, cout), jnp.float32)
        for kw in range(3):
            w_idx = 2 * o_idx + kw - 1            # input col read by output col o
            valid = (w_idx >= 0) & (w_idx < w_in)
            sel = jnp.zeros((w_in, wo), jnp.float32)
            sel = sel.at[jnp.clip(w_idx, 0, w_in - 1), o_idx].add(
                jnp.where(valid, 1.0, 0.0))
            m = m + jnp.einsum("wo,ic->wioc", sel, wconv[kh, kw])
        per_kh.append(m.reshape(w_in * cin, wo * cout))
    return jnp.concatenate(per_kh, axis=0).astype(jnp.bfloat16)


def _build_epilogue_row(v, wo):
    """Tile a per-channel vector across the (w*C + c)-ordered output row."""
    return jnp.tile(v.astype(jnp.float32), (wo,)).reshape(1, -1)


def init_params(key):
    """Raw parameters with PyTorch-default-like initializers."""
    p = {}
    keys = jax.random.split(key, 4 * len(_CHANNELS) + 2)
    ki = 0
    for li, (cin, cout) in enumerate(_CHANNELS, start=1):
        bound = (9 * cin) ** -0.5
        p[f"w{li}"] = jax.random.uniform(keys[ki], (3, 3, cin, cout),
                                         jnp.float32, -bound, bound); ki += 1
        p[f"b{li}"] = jax.random.uniform(keys[ki], (cout,),
                                         jnp.float32, -bound, bound); ki += 1
        if li == 1:
            p[f"s{li}"] = jnp.ones((cout,), jnp.float32)      # no BatchNorm
            p[f"t{li}"] = jnp.zeros((cout,), jnp.float32)
            ki += 2
        else:
            gamma = 1.0 + 0.1 * jax.random.normal(keys[ki], (cout,), jnp.float32); ki += 1
            beta = 0.1 * jax.random.normal(keys[ki], (cout,), jnp.float32); ki += 1
            running_mean = jnp.zeros((cout,), jnp.float32)
            running_var = jnp.ones((cout,), jnp.float32)
            s = gamma / jnp.sqrt(running_var + _BN_EPS)
            p[f"s{li}"] = s
            p[f"t{li}"] = beta - running_mean * s
    d_in = 128 * (32 // 2 ** 4) ** 2          # = 512
    bound = d_in ** -0.5
    p["wl"] = jax.random.uniform(keys[ki], (d_in, 1), jnp.float32,
                                 -bound, bound); ki += 1
    p["bl"] = jax.random.uniform(keys[ki], (1,), jnp.float32, -bound, bound)
    return p


def prepare_operands(p):
    """One-time prep: fold im2row structure / stride / padding / BN affine /
    flatten permutation into the kernel operand list."""
    ops = []
    for li, (_, _) in enumerate(_CHANNELS, start=1):
        w_in = _SPATIAL[li - 1]
        wo = w_in // 2
        w = _build_window_gemm_weight(p[f"w{li}"], w_in)
        if li == 1:                 # pad K from 96 to 128 (MXU-pass aligned)
            w = jnp.concatenate([w, jnp.zeros((32, w.shape[1]), w.dtype)], axis=0)
        ops.append(w)
        ops.append(_build_epilogue_row(p[f"b{li}"], wo))
        if li > 1:                  # layer 1 has no BatchNorm
            ops.append(_build_epilogue_row(p[f"s{li}"], wo))
            ops.append(_build_epilogue_row(p[f"t{li}"], wo))
    # PyTorch flattens NCHW: feature = c*4 + h*2 + w.  Pre-permute to the
    # kernel's per-row (w*128 + c) order, split by output row h.
    wl = jnp.transpose(p["wl"].reshape(128, 2, 2), (1, 2, 0))   # (h, w, c)
    ops.append(wl.reshape(2, 2 * 128).astype(jnp.float32))
    ops.append(p["bl"].reshape(1, 1).astype(jnp.float32))
    return tuple(ops)


# --------------------------------- forward --------------------------------- #

@functools.partial(jax.jit, static_argnames=("batch_tile",))
def discriminator_forward(img_nchw, operands, batch_tile=8):
    """img_nchw: (B, 1, 32, 32) f32 -> validity (B, 1) f32."""
    B = img_nchw.shape[0]
    bt = batch_tile
    n_tiles = pl.cdiv(B, bt)
    Bp = n_tiles * bt

    # Layer-1 im2row windows, built once in XLA:
    #   win[t*16*bt + ho*bt + b, kh*32 + w] = img[t*bt+b, 0, 2*ho+kh-1, w]
    # (zero outside the image; lanes 96..127 are zero K-padding).
    x = img_nchw.reshape(B, 32, 32).astype(jnp.float32)
    x = jnp.pad(x, ((0, Bp - B), (1, 1), (0, 0)))                         # (Bp, 34, 32)
    win = jnp.stack([x[:, kh:kh + 32:2, :] for kh in range(3)], axis=2)   # (Bp,16,3,32)
    win = win.reshape(n_tiles, bt, 16, 96).transpose(0, 2, 1, 3)          # (T,16,bt,96)
    win = win.reshape(n_tiles * 16 * bt, 96)
    win = jnp.pad(win, ((0, 0), (0, 32))).astype(jnp.bfloat16)            # K: 96 -> 128

    def _const_spec(a):
        return pl.BlockSpec(a.shape, lambda i, _nd=a.ndim: (0,) * _nd)

    out = pl.pallas_call(
        _discriminator_kernel,
        out_shape=jax.ShapeDtypeStruct((Bp, 1), jnp.float32),
        grid=(n_tiles,),
        in_specs=[pl.BlockSpec((16 * bt, 128), lambda i: (i, 0))]
                 + [_const_spec(a) for a in operands],
        out_specs=pl.BlockSpec((bt, 1), lambda i: (i, 0)),
        scratch_shapes=[
            pltpu.VMEM((8 * bt, 768), jnp.float32),   # layer-2 im2row windows
            pltpu.VMEM((4 * bt, 768), jnp.float32),   # layer-3 im2row windows
            pltpu.VMEM((2 * bt, 768), jnp.float32),   # layer-4 im2row windows
        ],
        compiler_params=pltpu.CompilerParams(
            dimension_semantics=("parallel",)),
    )(win, *operands)
    return out[:B]


# ------------------------- pure-JAX f32 reference -------------------------- #

def reference_forward(img_nchw, p):
    """f32 reference with identical eval-mode semantics (for validation)."""
    x = jnp.transpose(img_nchw, (0, 2, 3, 1)).astype(jnp.float32)   # NHWC
    for li, (cin, cout) in enumerate(_CHANNELS, start=1):
        B, H, W, _ = x.shape
        Ho, Wo = H // 2, W // 2
        xp = jnp.pad(x, ((0, 0), (1, 1), (1, 1), (0, 0)))
        cols = [xp[:, kh:kh + 2 * Ho:2, kw:kw + 2 * Wo:2, :]
                for kh in range(3) for kw in range(3)]
        a = jnp.concatenate(cols, axis=-1).reshape(B * Ho * Wo, 9 * cin)
        y = a @ p[f"w{li}"].reshape(9 * cin, cout) + p[f"b{li}"]
        y = jnp.where(y >= 0.0, y, 0.2 * y)
        y = y * p[f"s{li}"] + p[f"t{li}"]
        x = y.reshape(B, Ho, Wo, cout)
    feat = jnp.transpose(x, (0, 3, 1, 2)).reshape(x.shape[0], -1)
    return jax.nn.sigmoid(feat @ p["wl"] + p["bl"])


# ----------------------------------- main ----------------------------------- #

if __name__ == "__main__":
    key = jax.random.PRNGKey(0)
    k_img, k_param = jax.random.split(key)
    # Linear(128 * (32 // 2**4)**2, 1) fixes the input spatial size to 32x32.
    img = jax.random.normal(k_img, (2, 1, 32, 32), jnp.float32)
    params = init_params(k_param)
    operands = prepare_operands(params)        # one-time parameter prep

    validity = discriminator_forward(img, operands)
    jax.block_until_ready(validity)

    assert validity.shape == (2, 1), validity.shape
    assert bool(jnp.all(jnp.isfinite(validity)))
    assert bool(jnp.all((validity >= 0.0) & (validity <= 1.0)))

    ref = reference_forward(img, params)
    max_err = float(jnp.max(jnp.abs(validity - ref)))
    assert max_err < 5e-2, f"mismatch vs f32 reference: {max_err}"

    print("KERNEL_OK")
</pallas_src>

<mosaic_0001>
module attributes {stable_mosaic.version = 11 : i64} {
  func.func @_discriminator_kernel(%arg0: i32, %arg1: memref<128x128xbf16, #tpu.memory_space<vmem>>, %arg2: memref<128x256xbf16, #tpu.memory_space<vmem>>, %arg3: memref<1x256xf32, #tpu.memory_space<vmem>>, %arg4: memref<768x256xbf16, #tpu.memory_space<vmem>>, %arg5: memref<1x256xf32, #tpu.memory_space<vmem>>, %arg6: memref<1x256xf32, #tpu.memory_space<vmem>>, %arg7: memref<1x256xf32, #tpu.memory_space<vmem>>, %arg8: memref<768x256xbf16, #tpu.memory_space<vmem>>, %arg9: memref<1x256xf32, #tpu.memory_space<vmem>>, %arg10: memref<1x256xf32, #tpu.memory_space<vmem>>, %arg11: memref<1x256xf32, #tpu.memory_space<vmem>>, %arg12: memref<768x256xbf16, #tpu.memory_space<vmem>>, %arg13: memref<1x256xf32, #tpu.memory_space<vmem>>, %arg14: memref<1x256xf32, #tpu.memory_space<vmem>>, %arg15: memref<1x256xf32, #tpu.memory_space<vmem>>, %arg16: memref<2x256xf32, #tpu.memory_space<vmem>>, %arg17: memref<1x1xf32, #tpu.memory_space<vmem>>, %arg18: memref<8x1xf32, #tpu.memory_space<vmem>>, %arg19: memref<64x768xf32, #tpu.memory_space<vmem>>, %arg20: memref<32x768xf32, #tpu.memory_space<vmem>>, %arg21: memref<16x768xf32, #tpu.memory_space<vmem>>) attributes {dimension_semantics = [#tpu.dimension_semantics<parallel>], iteration_bounds = array<i64: 1>, scalar_prefetch = 0 : i64, scratch_operands = 3 : i64, tpu.core_type = #tpu.core_type<tc>, window_params = [{transform_indices = @transform_0, window_bounds = array<i64: 128, 128>}, {pipeline_mode = #tpu.pipeline_mode<synchronous>, transform_indices = @transform_1, window_bounds = array<i64: 128, 256>}, {pipeline_mode = #tpu.pipeline_mode<synchronous>, transform_indices = @transform_2, window_bounds = array<i64: 1, 256>}, {pipeline_mode = #tpu.pipeline_mode<synchronous>, transform_indices = @transform_3, window_bounds = array<i64: 768, 256>}, {pipeline_mode = #tpu.pipeline_mode<synchronous>, transform_indices = @transform_4, window_bounds = array<i64: 1, 256>}, {pipeline_mode = #tpu.pipeline_mode<synchronous>, transform_indices = @transform_5, window_bounds = array<i64: 1, 256>}, {pipeline_mode = #tpu.pipeline_mode<synchronous>, transform_indices = @transform_6, window_bounds = array<i64: 1, 256>}, {pipeline_mode = #tpu.pipeline_mode<synchronous>, transform_indices = @transform_7, window_bounds = array<i64: 768, 256>}, {pipeline_mode = #tpu.pipeline_mode<synchronous>, transform_indices = @transform_8, window_bounds = array<i64: 1, 256>}, {pipeline_mode = #tpu.pipeline_mode<synchronous>, transform_indices = @transform_9, window_bounds = array<i64: 1, 256>}, {pipeline_mode = #tpu.pipeline_mode<synchronous>, transform_indices = @transform_10, window_bounds = array<i64: 1, 256>}, {pipeline_mode = #tpu.pipeline_mode<synchronous>, transform_indices = @transform_11, window_bounds = array<i64: 768, 256>}, {pipeline_mode = #tpu.pipeline_mode<synchronous>, transform_indices = @transform_12, window_bounds = array<i64: 1, 256>}, {pipeline_mode = #tpu.pipeline_mode<synchronous>, transform_indices = @transform_13, window_bounds = array<i64: 1, 256>}, {pipeline_mode = #tpu.pipeline_mode<synchronous>, transform_indices = @transform_14, window_bounds = array<i64: 1, 256>}, {pipeline_mode = #tpu.pipeline_mode<synchronous>, transform_indices = @transform_15, window_bounds = array<i64: 2, 256>}, {pipeline_mode = #tpu.pipeline_mode<synchronous>, transform_indices = @transform_16, window_bounds = array<i64: 1, 1>}, {transform_indices = @transform_17, window_bounds = array<i64: 8, 1>}]} {
    %c0 = arith.constant 0 : index
    %c0_0 = arith.constant 0 : index
    %0 = vector.load %arg1[%c0, %c0_0] : memref<128x128xbf16, #tpu.memory_space<vmem>>, vector<128x128xbf16>
    %c0_1 = arith.constant 0 : index
    %c0_2 = arith.constant 0 : index
    %1 = vector.load %arg2[%c0_1, %c0_2] : memref<128x256xbf16, #tpu.memory_space<vmem>>, vector<128x256xbf16>
    %cst = arith.constant dense<0.000000e+00> : vector<128x256xf32>
    %2 = tpu.matmul %0, %1, %cst {dimension_numbers = #tpu.dot_dimension_numbers<[1], [0], [0], [1], [0, 0, 1, 1], [], []>} : vector<128x128xbf16>, vector<128x256xbf16>, vector<128x256xf32> -> vector<128x256xf32>
    %c0_3 = arith.constant 0 : index
    %c0_4 = arith.constant 0 : index
    %3 = vector.load %arg3[%c0_3, %c0_4] : memref<1x256xf32, #tpu.memory_space<vmem>>, vector<1x256xf32>
    %4 = vector.broadcast %3 : vector<1x256xf32> to vector<128x256xf32>
    %5 = arith.addf %2, %4 : vector<128x256xf32>
    %cst_5 = arith.constant 0.000000e+00 : f32
    %6 = vector.broadcast %cst_5 : f32 to vector<128x256xf32>
    %7 = arith.cmpf oge, %5, %6 : vector<128x256xf32>
    %cst_6 = arith.constant 2.000000e-01 : f32
    %8 = vector.broadcast %cst_6 : f32 to vector<128x256xf32>
    %9 = arith.mulf %8, %5 : vector<128x256xf32>
    %10 = arith.select %7, %5, %9 : vector<128x256xi1>, vector<128x256xf32>
    %cst_7 = arith.constant 0.000000e+00 : f32
    %11 = vector.broadcast %cst_7 : f32 to vector<8x256xf32>
    %c0_8 = arith.constant 0 : index
    %c0_9 = arith.constant 0 : index
    %12 = vector.load %arg19[%c0_8, %c0_9] : memref<64x768xf32, #tpu.memory_space<vmem>>, vector<8x256xf32>
    tpu.vector_store %arg19[%c0_8, %c0_9], %11 {strides = array<i32>} : memref<64x768xf32, #tpu.memory_space<vmem>>, vector<8x256xf32>,
    %13 = vector.extract_strided_slice %10 {offsets = [0, 0], sizes = [8, 256], strides = [1, 1]} : vector<128x256xf32> to vector<8x256xf32>
    %c0_10 = arith.constant 0 : index
    %c256 = arith.constant 256 : index
    %14 = vector.load %arg19[%c0_10, %c256] : memref<64x768xf32, #tpu.memory_space<vmem>>, vector<8x256xf32>
    tpu.vector_store %arg19[%c0_10, %c256], %13 {strides = array<i32>} : memref<64x768xf32, #tpu.memory_space<vmem>>, vector<8x256xf32>,
    %15 = vector.extract_strided_slice %10 {offsets = [8, 0], sizes = [8, 256], strides = [1, 1]} : vector<128x256xf32> to vector<8x256xf32>
    %c0_11 = arith.constant 0 : index
    %c512 = arith.constant 512 : index
    %16 = vector.load %arg19[%c0_11, %c512] : memref<64x768xf32, #tpu.memory_space<vmem>>, vector<8x256xf32>
    tpu.vector_store %arg19[%c0_11, %c512], %15 {strides = array<i32>} : memref<64x768xf32, #tpu.memory_space<vmem>>, vector<8x256xf32>,
    %c8 = arith.constant 8 : index
    %c0_12 = arith.constant 0 : index
    %17 = vector.load %arg19[%c8, %c0_12] : memref<64x768xf32, #tpu.memory_space<vmem>>, vector<8x256xf32>
    tpu.vector_store %arg19[%c8, %c0_12], %15 {strides = array<i32>} : memref<64x768xf32, #tpu.memory_space<vmem>>, vector<8x256xf32>,
    %18 = vector.extract_strided_slice %10 {offsets = [16, 0], sizes = [8, 256], strides = [1, 1]} : vector<128x256xf32> to vector<8x256xf32>
    %c8_13 = arith.constant 8 : index
    %c256_14 = arith.constant 256 : index
    %19 = vector.load %arg19[%c8_13, %c256_14] : memref<64x768xf32, #tpu.memory_space<vmem>>, vector<8x256xf32>
    tpu.vector_store %arg19[%c8_13, %c256_14], %18 {strides = array<i32>} : memref<64x768xf32, #tpu.memory_space<vmem>>, vector<8x256xf32>,
    %20 = vector.extract_strided_slice %10 {offsets = [24, 0], sizes = [8, 256], strides = [1, 1]} : vector<128x256xf32> to vector<8x256xf32>
    %c8_15 = arith.constant 8 : index
    %c512_16 = arith.constant 512 : index
    %21 = vector.load %arg19[%c8_15, %c512_16] : memref<64x768xf32, #tpu.memory_space<vmem>>, vector<8x256xf32>
    tpu.vector_store %arg19[%c8_15, %c512_16], %20 {strides = array<i32>} : memref<64x768xf32, #tpu.memory_space<vmem>>, vector<8x256xf32>,
    %c16 = arith.constant 16 : index
    %c0_17 = arith.constant 0 : index
    %22 = vector.load %arg19[%c16, %c0_17] : memref<64x768xf32, #tpu.memory_space<vmem>>, vector<8x256xf32>
    tpu.vector_store %arg19[%c16, %c0_17], %20 {strides = array<i32>} : memref<64x768xf32, #tpu.memory_space<vmem>>, vector<8x256xf32>,
    %23 = vector.extract_strided_slice %10 {offsets = [32, 0], sizes = [8, 256], strides = [1, 1]} : vector<128x256xf32> to vector<8x256xf32>
    %c16_18 = arith.constant 16 : index
    %c256_19 = arith.constant 256 : index
    %24 = vector.load %arg19[%c16_18, %c256_19] : memref<64x768xf32, #tpu.memory_space<vmem>>, vector<8x256xf32>
    tpu.vector_store %arg19[%c16_18, %c256_19], %23 {strides = array<i32>} : memref<64x768xf32, #tpu.memory_space<vmem>>, vector<8x256xf32>,
    %25 = vector.extract_strided_slice %10 {offsets = [40, 0], sizes = [8, 256], strides = [1, 1]} : vector<128x256xf32> to vector<8x256xf32>
    %c16_20 = arith.constant 16 : index
    %c512_21 = arith.constant 512 : index
    %26 = vector.load %arg19[%c16_20, %c512_21] : memref<64x768xf32, #tpu.memory_space<vmem>>, vector<8x256xf32>
    tpu.vector_store %arg19[%c16_20, %c512_21], %25 {strides = array<i32>} : memref<64x768xf32, #tpu.memory_space<vmem>>, vector<8x256xf32>,
    %c24 = arith.constant 24 : index
    %c0_22 = arith.constant 0 : index
    %27 = vector.load %arg19[%c24, %c0_22] : memref<64x768xf32, #tpu.memory_space<vmem>>, vector<8x256xf32>
    tpu.vector_store %arg19[%c24, %c0_22], %25 {strides = array<i32>} : memref<64x768xf32, #tpu.memory_space<vmem>>, vector<8x256xf32>,
    %28 = vector.extract_strided_slice %10 {offsets = [48, 0], sizes = [8, 256], strides = [1, 1]} : vector<128x256xf32> to vector<8x256xf32>
    %c24_23 = arith.constant 24 : index
    %c256_24 = arith.constant 256 : index
    %29 = vector.load %arg19[%c24_23, %c256_24] : memref<64x768xf32, #tpu.memory_space<vmem>>, vector<8x256xf32>
    tpu.vector_store %arg19[%c24_23, %c256_24], %28 {strides = array<i32>} : memref<64x768xf32, #tpu.memory_space<vmem>>, vector<8x256xf32>,
    %30 = vector.extract_strided_slice %10 {offsets = [56, 0], sizes = [8, 256], strides = [1, 1]} : vector<128x256xf32> to vector<8x256xf32>
    %c24_25 = arith.constant 24 : index
    %c512_26 = arith.constant 512 : index
    %31 = vector.load %arg19[%c24_25, %c512_26] : memref<64x768xf32, #tpu.memory_space<vmem>>, vector<8x256xf32>
    tpu.vector_store %arg19[%c24_25, %c512_26], %30 {strides = array<i32>} : memref<64x768xf32, #tpu.memory_space<vmem>>, vector<8x256xf32>,
    %c32 = arith.constant 32 : index
    %c0_27 = arith.constant 0 : index
    %32 = vector.load %arg19[%c32, %c0_27] : memref<64x768xf32, #tpu.memory_space<vmem>>, vector<8x256xf32>
    tpu.vector_store %arg19[%c32, %c0_27], %30 {strides = array<i32>} : memref<64x768xf32, #tpu.memory_space<vmem>>, vector<8x256xf32>,
    %33 = vector.extract_strided_slice %10 {offsets = [64, 0], sizes = [8, 256], strides = [1, 1]} : vector<128x256xf32> to vector<8x256xf32>
    %c32_28 = arith.constant 32 : index
    %c256_29 = arith.constant 256 : index
    %34 = vector.load %arg19[%c32_28, %c256_29] : memref<64x768xf32, #tpu.memory_space<vmem>>, vector<8x256xf32>
    tpu.vector_store %arg19[%c32_28, %c256_29], %33 {strides = array<i32>} : memref<64x768xf32, #tpu.memory_space<vmem>>, vector<8x256xf32>,
    %35 = vector.extract_strided_slice %10 {offsets = [72, 0], sizes = [8, 256], strides = [1, 1]} : vector<128x256xf32> to vector<8x256xf32>
    %c32_30 = arith.constant 32 : index
    %c512_31 = arith.constant 512 : index
    %36 = vector.load %arg19[%c32_30, %c512_31] : memref<64x768xf32, #tpu.memory_space<vmem>>, vector<8x256xf32>
    tpu.vector_store %arg19[%c32_30, %c512_31], %35 {strides = array<i32>} : memref<64x768xf32, #tpu.memory_space<vmem>>, vector<8x256xf32>,
    %c40 = arith.constant 40 : index
    %c0_32 = arith.constant 0 : index
    %37 = vector.load %arg19[%c40, %c0_32] : memref<64x768xf32, #tpu.memory_space<vmem>>, vector<8x256xf32>
    tpu.vector_store %arg19[%c40, %c0_32], %35 {strides = array<i32>} : memref<64x768xf32, #tpu.memory_space<vmem>>, vector<8x256xf32>,
    %38 = vector.extract_strided_slice %10 {offsets = [80, 0], sizes = [8, 256], strides = [1, 1]} : vector<128x256xf32> to vector<8x256xf32>
    %c40_33 = arith.constant 40 : index
    %c256_34 = arith.constant 256 : index
    %39 = vector.load %arg19[%c40_33, %c256_34] : memref<64x768xf32, #tpu.memory_space<vmem>>, vector<8x256xf32>
    tpu.vector_store %arg19[%c40_33, %c256_34], %38 {strides = array<i32>} : memref<64x768xf32, #tpu.memory_space<vmem>>, vector<8x256xf32>,
    %40 = vector.extract_strided_slice %10 {offsets = [88, 0], sizes = [8, 256], strides = [1, 1]} : vector<128x256xf32> to vector<8x256xf32>
    %c40_35 = arith.constant 40 : index
    %c512_36 = arith.constant 512 : index
    %41 = vector.load %arg19[%c40_35, %c512_36] : memref<64x768xf32, #tpu.memory_space<vmem>>, vector<8x256xf32>
    tpu.vector_store %arg19[%c40_35, %c512_36], %40 {strides = array<i32>} : memref<64x768xf32, #tpu.memory_space<vmem>>, vector<8x256xf32>,
    %c48 = arith.constant 48 : index
    %c0_37 = arith.constant 0 : index
    %42 = vector.load %arg19[%c48, %c0_37] : memref<64x768xf32, #tpu.memory_space<vmem>>, vector<8x256xf32>
    tpu.vector_store %arg19[%c48, %c0_37], %40 {strides = array<i32>} : memref<64x768xf32, #tpu.memory_space<vmem>>, vector<8x256xf32>,
    %43 = vector.extract_strided_slice %10 {offsets = [96, 0], sizes = [8, 256], strides = [1, 1]} : vector<128x256xf32> to vector<8x256xf32>
    %c48_38 = arith.constant 48 : index
    %c256_39 = arith.constant 256 : index
    %44 = vector.load %arg19[%c48_38, %c256_39] : memref<64x768xf32, #tpu.memory_space<vmem>>, vector<8x256xf32>
    tpu.vector_store %arg19[%c48_38, %c256_39], %43 {strides = array<i32>} : memref<64x768xf32, #tpu.memory_space<vmem>>, vector<8x256xf32>,
    %45 = vector.extract_strided_slice %10 {offsets = [104, 0], sizes = [8, 256], strides = [1, 1]} : vector<128x256xf32> to vector<8x256xf32>
    %c48_40 = arith.constant 48 : index
    %c512_41 = arith.constant 512 : index
    %46 = vector.load %arg19[%c48_40, %c512_41] : memref<64x768xf32, #tpu.memory_space<vmem>>, vector<8x256xf32>
    tpu.vector_store %arg19[%c48_40, %c512_41], %45 {strides = array<i32>} : memref<64x768xf32, #tpu.memory_space<vmem>>, vector<8x256xf32>,
    %c56 = arith.constant 56 : index
    %c0_42 = arith.constant 0 : index
    %47 = vector.load %arg19[%c56, %c0_42] : memref<64x768xf32, #tpu.memory_space<vmem>>, vector<8x256xf32>
    tpu.vector_store %arg19[%c56, %c0_42], %45 {strides = array<i32>} : memref<64x768xf32, #tpu.memory_space<vmem>>, vector<8x256xf32>,
    %48 = vector.extract_strided_slice %10 {offsets = [112, 0], sizes = [8, 256], strides = [1, 1]} : vector<128x256xf32> to vector<8x256xf32>
    %c56_43 = arith.constant 56 : index
    %c256_44 = arith.constant 256 : index
    %49 = vector.load %arg19[%c56_43, %c256_44] : memref<64x768xf32, #tpu.memory_space<vmem>>, vector<8x256xf32>
    tpu.vector_store %arg19[%c56_43, %c256_44], %48 {strides = array<i32>} : memref<64x768xf32, #tpu.memory_space<vmem>>, vector<8x256xf32>,
    %50 = vector.extract_strided_slice %10 {offsets = [120, 0], sizes = [8, 256], strides = [1, 1]} : vector<128x256xf32> to vector<8x256xf32>
    %c56_45 = arith.constant 56 : index
    %c512_46 = arith.constant 512 : index
    %51 = vector.load %arg19[%c56_45, %c512_46] : memref<64x768xf32, #tpu.memory_space<vmem>>, vector<8x256xf32>
    tpu.vector_store %arg19[%c56_45, %c512_46], %50 {strides = array<i32>} : memref<64x768xf32, #tpu.memory_space<vmem>>, vector<8x256xf32>,
    %c0_47 = arith.constant 0 : index
    %c0_48 = arith.constant 0 : index
    %52 = vector.load %arg19[%c0_47, %c0_48] : memref<64x768xf32, #tpu.memory_space<vmem>>, vector<64x768xf32>
    %53 = arith.truncf %52 : vector<64x768xf32> to vector<64x768xbf16>
    %c0_49 = arith.constant 0 : index
    %c0_50 = arith.constant 0 : index
    %54 = vector.load %arg4[%c0_49, %c0_50] : memref<768x256xbf16, #tpu.memory_space<vmem>>, vector<768x256xbf16>
    %cst_51 = arith.constant dense<0.000000e+00> : vector<64x256xf32>
    %55 = tpu.matmul %53, %54, %cst_51 {dimension_numbers = #tpu.dot_dimension_numbers<[1], [0], [0], [1], [0, 0, 1, 1], [], []>} : vector<64x768xbf16>, vector<768x256xbf16>, vector<64x256xf32> -> vector<64x256xf32>
    %c0_52 = arith.constant 0 : index
    %c0_53 = arith.constant 0 : index
    %56 = vector.load %arg5[%c0_52, %c0_53] : memref<1x256xf32, #tpu.memory_space<vmem>>, vector<1x256xf32>
    %57 = vector.broadcast %56 : vector<1x256xf32> to vector<64x256xf32>
    %58 = arith.addf %55, %57 : vector<64x256xf32>
    %cst_54 = arith.constant 0.000000e+00 : f32
    %59 = vector.broadcast %cst_54 : f32 to vector<64x256xf32>
    %60 = arith.cmpf oge, %58, %59 : vector<64x256xf32>
    %cst_55 = arith.constant 2.000000e-01 : f32
    %61 = vector.broadcast %cst_55 : f32 to vector<64x256xf32>
    %62 = arith.mulf %61, %58 : vector<64x256xf32>
    %63 = arith.select %60, %58, %62 : vector<64x256xi1>, vector<64x256xf32>
    %c0_56 = arith.constant 0 : index
    %c0_57 = arith.constant 0 : index
    %64 = vector.load %arg6[%c0_56, %c0_57] : memref<1x256xf32, #tpu.memory_space<vmem>>, vector<1x256xf32>
    %65 = vector.broadcast %64 : vector<1x256xf32> to vector<64x256xf32>
    %66 = arith.mulf %63, %65 : vector<64x256xf32>
    %c0_58 = arith.constant 0 : index
    %c0_59 = arith.constant 0 : index
    %67 = vector.load %arg7[%c0_58, %c0_59] : memref<1x256xf32, #tpu.memory_space<vmem>>, vector<1x256xf32>
    %68 = vector.broadcast %67 : vector<1x256xf32> to vector<64x256xf32>
    %69 = arith.addf %66, %68 : vector<64x256xf32>
    %cst_60 = arith.constant 0.000000e+00 : f32
    %70 = vector.broadcast %cst_60 : f32 to vector<8x256xf32>
    %c0_61 = arith.constant 0 : index
    %c0_62 = arith.constant 0 : index
    %71 = vector.load %arg20[%c0_61, %c0_62] : memref<32x768xf32, #tpu.memory_space<vmem>>, vector<8x256xf32>
    tpu.vector_store %arg20[%c0_61, %c0_62], %70 {strides = array<i32>} : memref<32x768xf32, #tpu.memory_space<vmem>>, vector<8x256xf32>,
    %72 = vector.extract_strided_slice %69 {offsets = [0, 0], sizes = [8, 256], strides = [1, 1]} : vector<64x256xf32> to vector<8x256xf32>
    %c0_63 = arith.constant 0 : index
    %c256_64 = arith.constant 256 : index
    %73 = vector.load %arg20[%c0_63, %c256_64] : memref<32x768xf32, #tpu.memory_space<vmem>>, vector<8x256xf32>
    tpu.vector_store %arg20[%c0_63, %c256_64], %72 {strides = array<i32>} : memref<32x768xf32, #tpu.memory_space<vmem>>, vector<8x256xf32>,
    %74 = vector.extract_strided_slice %69 {offsets = [8, 0], sizes = [8, 256], strides = [1, 1]} : vector<64x256xf32> to vector<8x256xf32>
    %c0_65 = arith.constant 0 : index
    %c512_66 = arith.constant 512 : index
    %75 = vector.load %arg20[%c0_65, %c512_66] : memref<32x768xf32, #tpu.memory_space<vmem>>, vector<8x256xf32>
    tpu.vector_store %arg20[%c0_65, %c512_66], %74 {strides = array<i32>} : memref<32x768xf32, #tpu.memory_space<vmem>>, vector<8x256xf32>,
    %c8_67 = arith.constant 8 : index
    %c0_68 = arith.constant 0 : index
    %76 = vector.load %arg20[%c8_67, %c0_68] : memref<32x768xf32, #tpu.memory_space<vmem>>, vector<8x256xf32>
    tpu.vector_store %arg20[%c8_67, %c0_68], %74 {strides = array<i32>} : memref<32x768xf32, #tpu.memory_space<vmem>>, vector<8x256xf32>,
    %77 = vector.extract_strided_slice %69 {offsets = [16, 0], sizes = [8, 256], strides = [1, 1]} : vector<64x256xf32> to vector<8x256xf32>
    %c8_69 = arith.constant 8 : index
    %c256_70 = arith.constant 256 : index
    %78 = vector.load %arg20[%c8_69, %c256_70] : memref<32x768xf32, #tpu.memory_space<vmem>>, vector<8x256xf32>
    tpu.vector_store %arg20[%c8_69, %c256_70], %77 {strides = array<i32>} : memref<32x768xf32, #tpu.memory_space<vmem>>, vector<8x256xf32>,
    %79 = vector.extract_strided_slice %69 {offsets = [24, 0], sizes = [8, 256], strides = [1, 1]} : vector<64x256xf32> to vector<8x256xf32>
    %c8_71 = arith.constant 8 : index
    %c512_72 = arith.constant 512 : index
    %80 = vector.load %arg20[%c8_71, %c512_72] : memref<32x768xf32, #tpu.memory_space<vmem>>, vector<8x256xf32>
    tpu.vector_store %arg20[%c8_71, %c512_72], %79 {strides = array<i32>} : memref<32x768xf32, #tpu.memory_space<vmem>>, vector<8x256xf32>,
    %c16_73 = arith.constant 16 : index
    %c0_74 = arith.constant 0 : index
    %81 = vector.load %arg20[%c16_73, %c0_74] : memref<32x768xf32, #tpu.memory_space<vmem>>, vector<8x256xf32>
    tpu.vector_store %arg20[%c16_73, %c0_74], %79 {strides = array<i32>} : memref<32x768xf32, #tpu.memory_space<vmem>>, vector<8x256xf32>,
    %82 = vector.extract_strided_slice %69 {offsets = [32, 0], sizes = [8, 256], strides = [1, 1]} : vector<64x256xf32> to vector<8x256xf32>
    %c16_75 = arith.constant 16 : index
    %c256_76 = arith.constant 256 : index
    %83 = vector.load %arg20[%c16_75, %c256_76] : memref<32x768xf32, #tpu.memory_space<vmem>>, vector<8x256xf32>
    tpu.vector_store %arg20[%c16_75, %c256_76], %82 {strides = array<i32>} : memref<32x768xf32, #tpu.memory_space<vmem>>, vector<8x256xf32>,
    %84 = vector.extract_strided_slice %69 {offsets = [40, 0], sizes = [8, 256], strides = [1, 1]} : vector<64x256xf32> to vector<8x256xf32>
    %c16_77 = arith.constant 16 : index
    %c512_78 = arith.constant 512 : index
    %85 = vector.load %arg20[%c16_77, %c512_78] : memref<32x768xf32, #tpu.memory_space<vmem>>, vector<8x256xf32>
    tpu.vector_store %arg20[%c16_77, %c512_78], %84 {strides = array<i32>} : memref<32x768xf32, #tpu.memory_space<vmem>>, vector<8x256xf32>,
    %c24_79 = arith.constant 24 : index
    %c0_80 = arith.constant 0 : index
    %86 = vector.load %arg20[%c24_79, %c0_80] : memref<32x768xf32, #tpu.memory_space<vmem>>, vector<8x256xf32>
    tpu.vector_store %arg20[%c24_79, %c0_80], %84 {strides = array<i32>} : memref<32x768xf32, #tpu.memory_space<vmem>>, vector<8x256xf32>,
    %87 = vector.extract_strided_slice %69 {offsets = [48, 0], sizes = [8, 256], strides = [1, 1]} : vector<64x256xf32> to vector<8x256xf32>
    %c24_81 = arith.constant 24 : index
    %c256_82 = arith.constant 256 : index
    %88 = vector.load %arg20[%c24_81, %c256_82] : memref<32x768xf32, #tpu.memory_space<vmem>>, vector<8x256xf32>
    tpu.vector_store %arg20[%c24_81, %c256_82], %87 {strides = array<i32>} : memref<32x768xf32, #tpu.memory_space<vmem>>, vector<8x256xf32>,
    %89 = vector.extract_strided_slice %69 {offsets = [56, 0], sizes = [8, 256], strides = [1, 1]} : vector<64x256xf32> to vector<8x256xf32>
    %c24_83 = arith.constant 24 : index
    %c512_84 = arith.constant 512 : index
    %90 = vector.load %arg20[%c24_83, %c512_84] : memref<32x768xf32, #tpu.memory_space<vmem>>, vector<8x256xf32>
    tpu.vector_store %arg20[%c24_83, %c512_84], %89 {strides = array<i32>} : memref<32x768xf32, #tpu.memory_space<vmem>>, vector<8x256xf32>,
    %c0_85 = arith.constant 0 : index
    %c0_86 = arith.constant 0 : index
    %91 = vector.load %arg20[%c0_85, %c0_86] : memref<32x768xf32, #tpu.memory_space<vmem>>, vector<32x768xf32>
    %92 = arith.truncf %91 : vector<32x768xf32> to vector<32x768xbf16>
    %c0_87 = arith.constant 0 : index
    %c0_88 = arith.constant 0 : index
    %93 = vector.load %arg8[%c0_87, %c0_88] : memref<768x256xbf16, #tpu.memory_space<vmem>>, vector<768x256xbf16>
    %cst_89 = arith.constant dense<0.000000e+00> : vector<32x256xf32>
    %94 = tpu.matmul %92, %93, %cst_89 {dimension_numbers = #tpu.dot_dimension_numbers<[1], [0], [0], [1], [0, 0, 1, 1], [], []>} : vector<32x768xbf16>, vector<768x256xbf16>, vector<32x256xf32> -> vector<32x256xf32>
    %c0_90 = arith.constant 0 : index
    %c0_91 = arith.constant 0 : index
    %95 = vector.load %arg9[%c0_90, %c0_91] : memref<1x256xf32, #tpu.memory_space<vmem>>, vector<1x256xf32>
    %96 = vector.broadcast %95 : vector<1x256xf32> to vector<32x256xf32>
    %97 = arith.addf %94, %96 : vector<32x256xf32>
    %cst_92 = arith.constant 0.000000e+00 : f32
    %98 = vector.broadcast %cst_92 : f32 to vector<32x256xf32>
    %99 = arith.cmpf oge, %97, %98 : vector<32x256xf32>
    %cst_93 = arith.constant 2.000000e-01 : f32
    %100 = vector.broadcast %cst_93 : f32 to vector<32x256xf32>
    %101 = arith.mulf %100, %97 : vector<32x256xf32>
    %102 = arith.select %99, %97, %101 : vector<32x256xi1>, vector<32x256xf32>
    %c0_94 = arith.constant 0 : index
    %c0_95 = arith.constant 0 : index
    %103 = vector.load %arg10[%c0_94, %c0_95] : memref<1x256xf32, #tpu.memory_space<vmem>>, vector<1x256xf32>
    %104 = vector.broadcast %103 : vector<1x256xf32> to vector<32x256xf32>
    %105 = arith.mulf %102, %104 : vector<32x256xf32>
    %c0_96 = arith.constant 0 : index
    %c0_97 = arith.constant 0 : index
    %106 = vector.load %arg11[%c0_96, %c0_97] : memref<1x256xf32, #tpu.memory_space<vmem>>, vector<1x256xf32>
    %107 = vector.broadcast %106 : vector<1x256xf32> to vector<32x256xf32>
    %108 = arith.addf %105, %107 : vector<32x256xf32>
    %cst_98 = arith.constant 0.000000e+00 : f32
    %109 = vector.broadcast %cst_98 : f32 to vector<8x256xf32>
    %c0_99 = arith.constant 0 : index
    %c0_100 = arith.constant 0 : index
    %110 = vector.load %arg21[%c0_99, %c0_100] : memref<16x768xf32, #tpu.memory_space<vmem>>, vector<8x256xf32>
    tpu.vector_store %arg21[%c0_99, %c0_100], %109 {strides = array<i32>} : memref<16x768xf32, #tpu.memory_space<vmem>>, vector<8x256xf32>,
    %111 = vector.extract_strided_slice %108 {offsets = [0, 0], sizes = [8, 256], strides = [1, 1]} : vector<32x256xf32> to vector<8x256xf32>
    %c0_101 = arith.constant 0 : index
    %c256_102 = arith.constant 256 : index
    %112 = vector.load %arg21[%c0_101, %c256_102] : memref<16x768xf32, #tpu.memory_space<vmem>>, vector<8x256xf32>
    tpu.vector_store %arg21[%c0_101, %c256_102], %111 {strides = array<i32>} : memref<16x768xf32, #tpu.memory_space<vmem>>, vector<8x256xf32>,
    %113 = vector.extract_strided_slice %108 {offsets = [8, 0], sizes = [8, 256], strides = [1, 1]} : vector<32x256xf32> to vector<8x256xf32>
    %c0_103 = arith.constant 0 : index
    %c512_104 = arith.constant 512 : index
    %114 = vector.load %arg21[%c0_103, %c512_104] : memref<16x768xf32, #tpu.memory_space<vmem>>, vector<8x256xf32>
    tpu.vector_store %arg21[%c0_103, %c512_104], %113 {strides = array<i32>} : memref<16x768xf32, #tpu.memory_space<vmem>>, vector<8x256xf32>,
    %c8_105 = arith.constant 8 : index
    %c0_106 = arith.constant 0 : index
    %115 = vector.load %arg21[%c8_105, %c0_106] : memref<16x768xf32, #tpu.memory_space<vmem>>, vector<8x256xf32>
    tpu.vector_store %arg21[%c8_105, %c0_106], %113 {strides = array<i32>} : memref<16x768xf32, #tpu.memory_space<vmem>>, vector<8x256xf32>,
    %116 = vector.extract_strided_slice %108 {offsets = [16, 0], sizes = [8, 256], strides = [1, 1]} : vector<32x256xf32> to vector<8x256xf32>
    %c8_107 = arith.constant 8 : index
    %c256_108 = arith.constant 256 : index
    %117 = vector.load %arg21[%c8_107, %c256_108] : memref<16x768xf32, #tpu.memory_space<vmem>>, vector<8x256xf32>
    tpu.vector_store %arg21[%c8_107, %c256_108], %116 {strides = array<i32>} : memref<16x768xf32, #tpu.memory_space<vmem>>, vector<8x256xf32>,
    %118 = vector.extract_strided_slice %108 {offsets = [24, 0], sizes = [8, 256], strides = [1, 1]} : vector<32x256xf32> to vector<8x256xf32>
    %c8_109 = arith.constant 8 : index
    %c512_110 = arith.constant 512 : index
    %119 = vector.load %arg21[%c8_109, %c512_110] : memref<16x768xf32, #tpu.memory_space<vmem>>, vector<8x256xf32>
    tpu.vector_store %arg21[%c8_109, %c512_110], %118 {strides = array<i32>} : memref<16x768xf32, #tpu.memory_space<vmem>>, vector<8x256xf32>,
    %c0_111 = arith.constant 0 : index
    %c0_112 = arith.constant 0 : index
    %120 = vector.load %arg21[%c0_111, %c0_112] : memref<16x768xf32, #tpu.memory_space<vmem>>, vector<16x768xf32>
    %121 = arith.truncf %120 : vector<16x768xf32> to vector<16x768xbf16>
    %c0_113 = arith.constant 0 : index
    %c0_114 = arith.constant 0 : index
    %122 = vector.load %arg12[%c0_113, %c0_114] : memref<768x256xbf16, #tpu.memory_space<vmem>>, vector<768x256xbf16>
    %cst_115 = arith.constant dense<0.000000e+00> : vector<16x256xf32>
    %123 = tpu.matmul %121, %122, %cst_115 {dimension_numbers = #tpu.dot_dimension_numbers<[1], [0], [0], [1], [0, 0, 1, 1], [], []>} : vector<16x768xbf16>, vector<768x256xbf16>, vector<16x256xf32> -> vector<16x256xf32>
    %c0_116 = arith.constant 0 : index
    %c0_117 = arith.constant 0 : index
    %124 = vector.load %arg13[%c0_116, %c0_117] : memref<1x256xf32, #tpu.memory_space<vmem>>, vector<1x256xf32>
    %125 = vector.broadcast %124 : vector<1x256xf32> to vector<16x256xf32>
    %126 = arith.addf %123, %125 : vector<16x256xf32>
    %cst_118 = arith.constant 0.000000e+00 : f32
    %127 = vector.broadcast %cst_118 : f32 to vector<16x256xf32>
    %128 = arith.cmpf oge, %126, %127 : vector<16x256xf32>
    %cst_119 = arith.constant 2.000000e-01 : f32
    %129 = vector.broadcast %cst_119 : f32 to vector<16x256xf32>
    %130 = arith.mulf %129, %126 : vector<16x256xf32>
    %131 = arith.select %128, %126, %130 : vector<16x256xi1>, vector<16x256xf32>
    %c0_120 = arith.constant 0 : index
    %c0_121 = arith.constant 0 : index
    %132 = vector.load %arg14[%c0_120, %c0_121] : memref<1x256xf32, #tpu.memory_space<vmem>>, vector<1x256xf32>
    %133 = vector.broadcast %132 : vector<1x256xf32> to vector<16x256xf32>
    %134 = arith.mulf %131, %133 : vector<16x256xf32>
    %c0_122 = arith.constant 0 : index
    %c0_123 = arith.constant 0 : index
    %135 = vector.load %arg15[%c0_122, %c0_123] : memref<1x256xf32, #tpu.memory_space<vmem>>, vector<1x256xf32>
    %136 = vector.broadcast %135 : vector<1x256xf32> to vector<16x256xf32>
    %137 = arith.addf %134, %136 : vector<16x256xf32>
    %138 = vector.extract_strided_slice %137 {offsets = [0, 0], sizes = [8, 256], strides = [1, 1]} : vector<16x256xf32> to vector<8x256xf32>
    %c0_124 = arith.constant 0 : index
    %c0_125 = arith.constant 0 : index
    %139 = vector.load %arg16[%c0_124, %c0_125] : memref<2x256xf32, #tpu.memory_space<vmem>>, vector<1x256xf32>
    %140 = vector.broadcast %139 : vector<1x256xf32> to vector<8x256xf32>
    %141 = arith.mulf %138, %140 : vector<8x256xf32>
    %142 = vector.extract_strided_slice %137 {offsets = [8, 0], sizes = [8, 256], strides = [1, 1]} : vector<16x256xf32> to vector<8x256xf32>
    %c1 = arith.constant 1 : index
    %c0_126 = arith.constant 0 : index
    %143 = vector.load %arg16[%c1, %c0_126] : memref<2x256xf32, #tpu.memory_space<vmem>>, vector<1x256xf32>
    %144 = vector.broadcast %143 : vector<1x256xf32> to vector<8x256xf32>
    %145 = arith.mulf %142, %144 : vector<8x256xf32>
    %146 = arith.addf %141, %145 : vector<8x256xf32>
    %cst_127 = arith.constant dense<0.000000e+00> : vector<8xf32>
    %147 = vector.multi_reduction <add>, %146, %cst_127 [1] : vector<8x256xf32> to vector<8xf32>
    %148 = vector.shape_cast %147 : vector<8xf32> to vector<8x1xf32>
    %c0_128 = arith.constant 0 : index
    %c0_129 = arith.constant 0 : index
    %149 = vector.load %arg17[%c0_128, %c0_129] : memref<1x1xf32, #tpu.memory_space<vmem>>, vector<1x1xf32>
    %150 = vector.broadcast %149 : vector<1x1xf32> to vector<8x1xf32>
    %151 = arith.addf %148, %150 : vector<8x1xf32>
    %cst_130 = arith.constant 0.000000e+00 : f32
    %152 = vector.broadcast %cst_130 : f32 to vector<8x1xf32>
    %153 = arith.subf %152, %151 : vector<8x1xf32>
    %154 = math.exp %153 : vector<8x1xf32>
    %cst_131 = arith.constant 1.000000e+00 : f32
    %155 = vector.broadcast %cst_131 : f32 to vector<8x1xf32>
    %156 = arith.addf %155, %154 : vector<8x1xf32>
    %cst_132 = arith.constant 1.000000e+00 : f32
    %157 = vector.broadcast %cst_132 : f32 to vector<8x1xf32>
    %158 = arith.divf %157, %156 : vector<8x1xf32>
    %c0_133 = arith.constant 0 : index
    %c0_134 = arith.constant 0 : index
    %159 = vector.load %arg18[%c0_133, %c0_134] : memref<8x1xf32, #tpu.memory_space<vmem>>, vector<8x1xf32>
    tpu.vector_store %arg18[%c0_133, %c0_134], %158 {strides = array<i32>} : memref<8x1xf32, #tpu.memory_space<vmem>>, vector<8x1xf32>,
    return
  }
  func.func @transform_0(%arg0: i32) -> (i32, i32) {
    %c0_i32 = arith.constant 0 : i32
    %c0_i32_0 = arith.constant 0 : i32
    return %arg0, %c0_i32 : i32, i32
  }
  func.func @transform_1(%arg0: i32) -> (i32, i32) {
    %c0_i32 = arith.constant 0 : i32
    %c0_i32_0 = arith.constant 0 : i32
    %c0_i32_1 = arith.constant 0 : i32
    return %c0_i32, %c0_i32_0 : i32, i32
  }
  func.func @transform_2(%arg0: i32) -> (i32, i32) {
    %c0_i32 = arith.constant 0 : i32
    %c0_i32_0 = arith.constant 0 : i32
    %c0_i32_1 = arith.constant 0 : i32
    return %c0_i32, %c0_i32_0 : i32, i32
  }
  func.func @transform_3(%arg0: i32) -> (i32, i32) {
    %c0_i32 = arith.constant 0 : i32
    %c0_i32_0 = arith.constant 0 : i32
    %c0_i32_1 = arith.constant 0 : i32
    return %c0_i32, %c0_i32_0 : i32, i32
  }
  func.func @transform_4(%arg0: i32) -> (i32, i32) {
    %c0_i32 = arith.constant 0 : i32
    %c0_i32_0 = arith.constant 0 : i32
    %c0_i32_1 = arith.constant 0 : i32
    return %c0_i32, %c0_i32_0 : i32, i32
  }
  func.func @transform_5(%arg0: i32) -> (i32, i32) {
    %c0_i32 = arith.constant 0 : i32
    %c0_i32_0 = arith.constant 0 : i32
    %c0_i32_1 = arith.constant 0 : i32
    return %c0_i32, %c0_i32_0 : i32, i32
  }
  func.func @transform_6(%arg0: i32) -> (i32, i32) {
    %c0_i32 = arith.constant 0 : i32
    %c0_i32_0 = arith.constant 0 : i32
    %c0_i32_1 = arith.constant 0 : i32
    return %c0_i32, %c0_i32_0 : i32, i32
  }
  func.func @transform_7(%arg0: i32) -> (i32, i32) {
    %c0_i32 = arith.constant 0 : i32
    %c0_i32_0 = arith.constant 0 : i32
    %c0_i32_1 = arith.constant 0 : i32
    return %c0_i32, %c0_i32_0 : i32, i32
  }
  func.func @transform_8(%arg0: i32) -> (i32, i32) {
    %c0_i32 = arith.constant 0 : i32
    %c0_i32_0 = arith.constant 0 : i32
    %c0_i32_1 = arith.constant 0 : i32
    return %c0_i32, %c0_i32_0 : i32, i32
  }
  func.func @transform_9(%arg0: i32) -> (i32, i32) {
    %c0_i32 = arith.constant 0 : i32
    %c0_i32_0 = arith.constant 0 : i32
    %c0_i32_1 = arith.constant 0 : i32
    return %c0_i32, %c0_i32_0 : i32, i32
  }
  func.func @transform_10(%arg0: i32) -> (i32, i32) {
    %c0_i32 = arith.constant 0 : i32
    %c0_i32_0 = arith.constant 0 : i32
    %c0_i32_1 = arith.constant 0 : i32
    return %c0_i32, %c0_i32_0 : i32, i32
  }
  func.func @transform_11(%arg0: i32) -> (i32, i32) {
    %c0_i32 = arith.constant 0 : i32
    %c0_i32_0 = arith.constant 0 : i32
    %c0_i32_1 = arith.constant 0 : i32
    return %c0_i32, %c0_i32_0 : i32, i32
  }
  func.func @transform_12(%arg0: i32) -> (i32, i32) {
    %c0_i32 = arith.constant 0 : i32
    %c0_i32_0 = arith.constant 0 : i32
    %c0_i32_1 = arith.constant 0 : i32
    return %c0_i32, %c0_i32_0 : i32, i32
  }
  func.func @transform_13(%arg0: i32) -> (i32, i32) {
    %c0_i32 = arith.constant 0 : i32
    %c0_i32_0 = arith.constant 0 : i32
    %c0_i32_1 = arith.constant 0 : i32
    return %c0_i32, %c0_i32_0 : i32, i32
  }
  func.func @transform_14(%arg0: i32) -> (i32, i32) {
    %c0_i32 = arith.constant 0 : i32
    %c0_i32_0 = arith.constant 0 : i32
    %c0_i32_1 = arith.constant 0 : i32
    return %c0_i32, %c0_i32_0 : i32, i32
  }
  func.func @transform_15(%arg0: i32) -> (i32, i32) {
    %c0_i32 = arith.constant 0 : i32
    %c0_i32_0 = arith.constant 0 : i32
    %c0_i32_1 = arith.constant 0 : i32
    return %c0_i32, %c0_i32_0 : i32, i32
  }
  func.func @transform_16(%arg0: i32) -> (i32, i32) {
    %c0_i32 = arith.constant 0 : i32
    %c0_i32_0 = arith.constant 0 : i32
    %c0_i32_1 = arith.constant 0 : i32
    return %c0_i32, %c0_i32_0 : i32, i32
  }
  func.func @transform_17(%arg0: i32) -> (i32, i32) {
    %c0_i32 = arith.constant 0 : i32
    %c0_i32_0 = arith.constant 0 : i32
    return %arg0, %c0_i32 : i32, i32
  }
}

</mosaic_0001>

<bundles_post_ra>
// kernel: discriminator_forward.1
= control target key start
LH: loop header
LB: loop body
LE: loop exit
PB: predicated region body
PF: predicated region fallthrough
CT: control target
= control target key end

     0   :  { %s5065_s0 = inlined_call_operand.vmem [shape: bf16[128,128], index: 0, kind: input, shape index: {}]   ;;  %s5066_s1 = inlined_call_operand.vmem [shape: bf16[128,256], index: 1, kind: input, shape index: {}]   ;;  %s5067_s2 = inlined_call_operand.vmem [shape: f32[1,256], index: 2, kind: input, shape index: {}]   ;;  %s5068_s3 = inlined_call_operand.vmem [shape: bf16[768,256], index: 3, kind: input, shape index: {}]   ;;  %s5069_s4 = inlined_call_operand.vmem [shape: f32[1,256], index: 4, kind: input, shape index: {}]   ;;  %s5070_s5 = inlined_call_operand.vmem [shape: f32[1,256], index: 5, kind: input, shape index: {}]   ;;  %s5071_s6 = inlined_call_operand.vmem [shape: f32[1,256], index: 6, kind: input, shape index: {}]   ;;  %s5072_s7 = inlined_call_operand.vmem [shape: bf16[768,256], index: 7, kind: input, shape index: {}]   ;;  %s5073_s8 = inlined_call_operand.vmem [shape: f32[1,256], index: 8, kind: input, shape index: {}]   ;;  %s5074_s9 = inlined_call_operand.vmem [shape: f32[1,256], index: 9, kind: input, shape index: {}]   ;;  %s5075_s10 = inlined_call_operand.vmem [shape: f32[1,256], index: 10, kind: input, shape index: {}]   ;;  %s5076_s11 = inlined_call_operand.hbm [shape: bf16[768,256], index: 11, kind: input, shape index: {}]   ;;  %s5077_s12 = inlined_call_operand.vmem [shape: f32[1,256], index: 12, kind: input, shape index: {}]   ;;  %s5078_s13 = inlined_call_operand.vmem [shape: f32[1,256], index: 13, kind: input, shape index: {}]   ;;  %s5079_s14 = inlined_call_operand.vmem [shape: f32[1,256], index: 14, kind: input, shape index: {}]   ;;  %s5080_s15 = inlined_call_operand.vmem [shape: f32[2,256], index: 15, kind: input, shape index: {}]   ;;  %s5081_s16 = inlined_call_operand.<no memory space> [shape: f32[1,1], index: 16, kind: input, shape index: {}]   ;;  %s5082_s17 = inlined_call_operand.vmem [shape: f32[8,1], index: 17, kind: output, shape index: {}]  }
   0x1   :  { %5085 = sst [smem:[#allocation9_spill]] %s5065_s0  ;;  %v22_v0 = vstv %s5081_s16 }
   0x2   :  { %5086 = sst [smem:[#allocation10_spill]] %s5066_s1  ;;  %23 = vst [vmem:[#allocation5] sm:$0x1] %v22_v0 }
   0x3   :  { %24 = vsyncpa [#allocation7], 0  ;;  %s4011_s26 = smov [#allocation6]  }
   0x4   :  { %s52_s27 = sshll.u32 %s4011_s26, 4  ;;  %s53_s27 = int_to_ptr.vmem [resolvable:$true] %s52_s27 }
   0x5   :  { %s3997_s28 = scalar_lea.vmem %s53_s27, 12288  ;;  %p4002_p1 = scmp.lt.s32.totalorder %s53_s27, %s53_s27 }
   0x6   :  { %p3998_p0 = scmp.ne.s32.totalorder %s53_s27, %s3997_s28  ;;  %p4003_p2 = scmp.lt.s32.totalorder %s3997_s28, %s3997_s28 }
   0x8   :  { %p4004_p3 = por %p4003_p2, %p4002_p1 }
   0xa   :  { %p4005_p4 = pnand %p4004_p3, %p3998_p0 }
   0xc   :  { %4008 = shalt.err (!%p4005_p4)
}
   0xd   :  { %s4012_s29 = smov 128   ;;  %s4013_s0 = smov 8  }
   0xe   :  { %58 = dma.hbm_to_vmem [thread:$0]  %s5076_s11, 12288, %s53_s27, [#allocation7], %s4012_s29, %s4012_s29, %s4013_s0  }
   0xf   :  { %4009 = dma.done.wait [#allocation7], 12288  }
  0x10   :  { %4010 = vsyncadd [#allocation7], 4294955008  ;;  %v4014_v1 = vmov 0   ;;  %s5087_s1 = sld [smem:[#allocation10_spill]]  ;;  %v3553_v15 = vld [vmem:[%s5068_s3 + $0x74] ss:$8 sps:$4 sm:$0xff]  }
  0x11   :  { %277 = vmatprep.mubr.bf16.mxu0 %v4014_v1  ;;  %v3555_v16 = vld [vmem:[%s5068_s3 + $0x70] ss:$8 sps:$4 sm:$0xff]   ;;  %v3556_v17 = vld [vmem:[%s5068_s3 + $0x64] ss:$8 sps:$4 sm:$0xff]   ;;  %1162 = vmatprep.subr.bf16.mxu1 %v3553_v15  ;;  %v3558_v18 = vld [vmem:[%s5068_s3 + $0x60] ss:$8 sps:$4 sm:$0xff]  }
  0x12   :  { %1163 = vmatpush1.bf16.msra.mxu1 %v3555_v16  ;;  %v3562_v20 = vld [vmem:[%s5068_s3 + $0x54] ss:$8 sps:$4 sm:$0xff]   ;;  %v3564_v22 = vld [vmem:[%s5068_s3 + $0x50] ss:$8 sps:$4 sm:$0xff]   ;;  %v3568_v24 = vld [vmem:[%s5068_s3 + $0x44] ss:$8 sps:$4 sm:$0xff]  }
  0x13   :  { %1164 = vmatprep.subr.bf16.mxu1 %v3556_v17  ;;  %v3561_v25 = vld [vmem:[%s5068_s3 + $0x174] ss:$8 sps:$4 sm:$0xff]   ;;  %s5088_s20 = sld [smem:[#allocation9_spill]]  ;;  %v3570_v27 = vld [vmem:[%s5068_s3 + $0x40] ss:$8 sps:$4 sm:$0xff]  }
  0x14   :  { %v3559_v28 = vld [vmem:[%s5068_s3 + $0x170] ss:$8 sps:$4 sm:$0xff]   ;;  %v3567_v29 = vld [vmem:[%s5068_s3 + $0x164] ss:$8 sps:$4 sm:$0xff]   ;;  %v3574_v30 = vld [vmem:[%s5068_s3 + $0x34] ss:$8 sps:$4 sm:$0xff]  }
  0x15   :  { %v3576_v31 = vld [vmem:[%s5068_s3 + $0x30] ss:$8 sps:$4 sm:$0xff]   ;;  %v3565_v32 = vld [vmem:[%s5068_s3 + $0x160] ss:$8 sps:$4 sm:$0xff]   ;;  %v3580_v33 = vld [vmem:[%s5068_s3 + $0x24] ss:$8 sps:$4 sm:$0xff]  }
  0x16   :  { %v3521_v2 = vld [vmem:[%s5087_s1 + $0x74] ss:$8 sps:$4 sm:$0xff]   ;;  %v3523_v3 = vld [vmem:[%s5087_s1 + $0x70] ss:$8 sps:$4 sm:$0xff]   ;;  %v3524_v4 = vld [vmem:[%s5087_s1 + $0x64] ss:$8 sps:$4 sm:$0xff]   ;;  %1165 = vmatpush1.bf16.msra.mxu1 %v3558_v18 }
  0x17   :  { %245 = vmatprep.subr.bf16.mxu0 %v3521_v2  ;;  %v3526_v5 = vld [vmem:[%s5087_s1 + $0x60] ss:$8 sps:$4 sm:$0xff]   ;;  %v3527_v6 = vld [vmem:[%s5087_s1 + $0x54] ss:$8 sps:$4 sm:$0xff]   ;;  %v3529_v7 = vld [vmem:[%s5087_s1 + $0x50] ss:$8 sps:$4 sm:$0xff]   ;;  %1166 = vmatprep.subr.bf16.mxu1 %v3562_v20 }
  0x18   :  { %246 = vmatpush1.bf16.msra.mxu0 %v3523_v3  ;;  %v3530_v8 = vld [vmem:[%s5087_s1 + $0x44] ss:$8 sps:$4 sm:$0xff]   ;;  %v3532_v9 = vld [vmem:[%s5087_s1 + $0x40] ss:$8 sps:$4 sm:$0xff]   ;;  %v3533_v10 = vld [vmem:[%s5087_s1 + $0x34] ss:$8 sps:$4 sm:$0xff]  }
  0x19   :  { %247 = vmatprep.subr.bf16.mxu0 %v3524_v4  ;;  %v3535_v11 = vld [vmem:[%s5087_s1 + $0x30] ss:$8 sps:$4 sm:$0xff]   ;;  %v3536_v12 = vld [vmem:[%s5087_s1 + $0x24] ss:$8 sps:$4 sm:$0xff]   ;;  %v3538_v13 = vld [vmem:[%s5087_s1 + $0x20] ss:$8 sps:$4 sm:$0xff]  }
  0x1a   :  { %v3539_v14 = vld [vmem:[%s5087_s1 + $0x14] ss:$8 sps:$4 sm:$0xff]   ;;  %v3541_v19 = vld [vmem:[%s5087_s1 + $0x10] ss:$8 sps:$4 sm:$0xff]   ;;  %v3542_v21 = vld [vmem:[%s5087_s1 + $0x4] ss:$8 sps:$4 sm:$0xff]   ;;  %1167 = vmatpush1.bf16.msra.mxu1 %v3564_v22 }
  0x1b   :  { %v3544_v23 = vld [vmem:[%s5087_s1] ss:$8 sps:$4 sm:$0xff]   ;;  %1168 = vmatprep.subr.bf16.mxu1 %v3568_v24  ;;  %v3573_v34 = vld [vmem:[%s5068_s3 + $0x154] ss:$8 sps:$4 sm:$0xff]   ;;  %v3571_v37 = vld [vmem:[%s5068_s3 + $0x150] ss:$8 sps:$4 sm:$0xff]  }
  0x1c   :  { %248 = vmatpush1.bf16.msra.mxu0 %v3526_v5  ;;  %v3545_v26 = vld [vmem:[%s5088_s20] sm:$0xff]   ;;  %v3546_v35 = vld [vmem:[%s5088_s20 + $0x8] sm:$0xff]   ;;  %v3586_v39 = vld [vmem:[%s5068_s3 + $0x14] ss:$8 sps:$4 sm:$0xff]  }
  0x1d   :  { %249 = vmatprep.subr.bf16.mxu0 %v3527_v6  ;;  %v3582_v36 = vld [vmem:[%s5068_s3 + $0x20] ss:$8 sps:$4 sm:$0xff]   ;;  %v3579_v38 = vld [vmem:[%s5068_s3 + $0x144] ss:$8 sps:$4 sm:$0xff]   ;;  %v3588_v40 = vld [vmem:[%s5068_s3 + $0x10] ss:$8 sps:$4 sm:$0xff]  }
  0x1e   :  { %1169 = vmatpush1.bf16.msra.mxu1 %v3570_v27  ;;  %v3577_v41 = vld [vmem:[%s5068_s3 + $0x140] ss:$8 sps:$4 sm:$0xff]   ;;  %v3592_v42 = vld [vmem:[%s5068_s3 + $0x4] ss:$8 sps:$4 sm:$0xff]   ;;  %v3585_v43 = vld [vmem:[%s5068_s3 + $0x134] ss:$8 sps:$4 sm:$0xff]   ;;  %v107_v27 = vlaneseq }
  0x1f   :  { %1170 = vmatprep.subr.bf16.mxu1 %v3574_v30  ;;  %v3547_v44 = vld [vmem:[%s5088_s20 + $0x10] sm:$0xff]   ;;  %v3594_v45 = vld [vmem:[%s5068_s3] ss:$8 sps:$4 sm:$0xff]   ;;  %v3591_v47 = vld [vmem:[%s5068_s3 + $0x124] ss:$8 sps:$4 sm:$0xff]  }
  0x20   :  { %250 = vmatpush1.bf16.msra.mxu0 %v3529_v7  ;;  %v3583_v46 = vld [vmem:[%s5068_s3 + $0x130] ss:$8 sps:$4 sm:$0xff]   ;;  %v3598_v48 = vld [vmem:[%s5068_s3 + $0xf4] ss:$8 sps:$4 sm:$0xff]   ;;  %v3589_v49 = vld [vmem:[%s5068_s3 + $0x120] ss:$8 sps:$4 sm:$0xff]  }
  0x21   :  { %251 = vmatprep.subr.bf16.mxu0 %v3530_v8  ;;  %v3600_v50 = vld [vmem:[%s5068_s3 + $0xf0] ss:$8 sps:$4 sm:$0xff]   ;;  %v3597_v51 = vld [vmem:[%s5068_s3 + $0x114] ss:$8 sps:$4 sm:$0xff]   ;;  %v3604_v52 = vld [vmem:[%s5068_s3 + $0xe4] ss:$8 sps:$4 sm:$0xff]  }
  0x22   :  { %1171 = vmatpush1.bf16.msra.mxu1 %v3576_v31  ;;  %v3548_v53 = vld [vmem:[%s5088_s20 + $0x18] sm:$0xff]   ;;  %v3606_v54 = vld [vmem:[%s5068_s3 + $0xe0] ss:$8 sps:$4 sm:$0xff]   ;;  %v3603_v56 = vld [vmem:[%s5068_s3 + $0x104] ss:$8 sps:$4 sm:$0xff]  }
  0x23   :  { %1172 = vmatprep.subr.bf16.mxu1 %v3580_v33  ;;  %v3595_v55 = vld [vmem:[%s5068_s3 + $0x110] ss:$8 sps:$4 sm:$0xff]   ;;  %v3610_v57 = vld [vmem:[%s5068_s3 + $0xd4] ss:$8 sps:$4 sm:$0xff]   ;;  %v3601_v59 = vld [vmem:[%s5068_s3 + $0x100] ss:$8 sps:$4 sm:$0xff]  }
  0x24   :  { %252 = vmatpush1.bf16.msra.mxu0 %v3532_v9  ;;  %v3612_v58 = vld [vmem:[%s5068_s3 + $0xd0] ss:$8 sps:$4 sm:$0xff]   ;;  %v3616_v60 = vld [vmem:[%s5068_s3 + $0xc4] ss:$8 sps:$4 sm:$0xff]   ;;  %v3609_v61 = vld [vmem:[%s5068_s3 + $0x1f4] ss:$8 sps:$4 sm:$0xff]  }
  0x25   :  { %253 = vmatprep.subr.bf16.mxu0 %v3533_v10  ;;  %v3549_v62 = vld [vmem:[%s5088_s20 + $0x20] sm:$0xff]   ;;  %v3607_v0 = vld [vmem:[%s5068_s3 + $0x1f0] ss:$8 sps:$4 sm:$0xff]   ;;  %v3622_v3 = vld [vmem:[%s5068_s3 + $0xb4] ss:$8 sps:$4 sm:$0xff]  }
  0x26   :  { %1173 = vmatpush1.bf16.msra.mxu1 %v3582_v36  ;;  %v3618_v63 = vld [vmem:[%s5068_s3 + $0xc0] ss:$8 sps:$4 sm:$0xff]   ;;  %v3615_v2 = vld [vmem:[%s5068_s3 + $0x1e4] ss:$8 sps:$4 sm:$0xff]   ;;  %v3624_v4 = vld [vmem:[%s5068_s3 + $0xb0] ss:$8 sps:$4 sm:$0xff]  }
  0x27   :  { %1174 = vmatprep.subr.bf16.mxu1 %v3586_v39  ;;  %v3613_v5 = vld [vmem:[%s5068_s3 + $0x1e0] ss:$8 sps:$4 sm:$0xff]   ;;  %v3621_v6 = vld [vmem:[%s5068_s3 + $0x1d4] ss:$8 sps:$4 sm:$0xff]   ;;  %v3619_v8 = vld [vmem:[%s5068_s3 + $0x1d0] ss:$8 sps:$4 sm:$0xff]  }
  0x28   :  { %254 = vmatpush1.bf16.msra.mxu0 %v3535_v11  ;;  %v3550_v7 = vld [vmem:[%s5088_s20 + $0x28] sm:$0xff]   ;;  %v3551_v11 = vld [vmem:[%s5088_s20 + $0x30] sm:$0xff]   ;;  %v105_v31 = vld [vmem:[%s5067_s2] sm:$0x3] }
  0x29   :  { %255 = vmatprep.subr.bf16.mxu0 %v3536_v12  ;;  %v3627_v9 = vld [vmem:[%s5068_s3 + $0x1c4] ss:$8 sps:$4 sm:$0xff]   ;;  %v3625_v10 = vld [vmem:[%s5068_s3 + $0x1c0] ss:$8 sps:$4 sm:$0xff]   ;;  %v3552_v12 = vld [vmem:[%s5088_s20 + $0x38] sm:$0xff]  }
  0x2a   :  { %1175 = vmatpush1.bf16.msra.mxu1 %v3588_v40  ;;  %v3633_v15 = vld [vmem:[%s5068_s3 + $0x1b4] ss:$8 sps:$4 sm:$0xff]   ;;  %v3636_v17 = vld [vmem:[%s5068_s3 + $0x90] ss:$8 sps:$4 sm:$0xff]   ;;  %v3639_v18 = vld [vmem:[%s5068_s3 + $0x1a4] ss:$8 sps:$4 sm:$0xff]  }
  0x2b   :  { %1176 = vmatprep.subr.bf16.mxu1 %v3592_v42  ;;  %v3634_v16 = vld [vmem:[%s5068_s3 + $0x94] ss:$8 sps:$4 sm:$0xff]   ;;  %v3640_v20 = vld [vmem:[%s5068_s3 + $0x84] ss:$8 sps:$4 sm:$0xff]  }
  0x2c   :  { %256 = vmatpush1.bf16.msra.mxu0 %v3538_v13  ;;  %v3628_v13 = vld [vmem:[%s5068_s3 + $0xa4] ss:$8 sps:$4 sm:$0xff]   ;;  %v3645_v22 = vld [vmem:[%s5068_s3 + $0x194] ss:$8 sps:$4 sm:$0xff]  }
  0x2d   :  { %257 = vmatprep.subr.bf16.mxu0 %v3539_v14  ;;  %v3630_v14 = vld [vmem:[%s5068_s3 + $0xa0] ss:$8 sps:$4 sm:$0xff]   ;;  %v3648_v24 = vld [vmem:[%s5068_s3 + $0x274] ss:$8 sps:$4 sm:$0xff]  }
  0x2e   :  { %1177 = vmatpush1.bf16.msra.mxu1 %v3594_v45 }
  0x2f   :  { %1178 = vmatprep.subr.bf16.mxu1 %v3598_v48 }
  0x30   :  { %258 = vmatpush1.bf16.msra.mxu0 %v3541_v19  ;;  %v3637_v19 = vld [vmem:[%s5068_s3 + $0x1a0] ss:$8 sps:$4 sm:$0xff]  }
  0x31   :  { %259 = vmatprep.subr.bf16.mxu0 %v3542_v21  ;;  %v3642_v21 = vld [vmem:[%s5068_s3 + $0x80] ss:$8 sps:$4 sm:$0xff]  }
  0x32   :  { %1179 = vmatpush2.bf16.msra.mxu1 %v3600_v50 }
  0x33   :  { %1180 = vmatprep.subr.bf16.mxu1 %v3604_v52 }
  0x34   :  { %260 = vmatpush1.bf16.msra.mxu0 %v3544_v23  ;;  %v3643_v23 = vld [vmem:[%s5068_s3 + $0x190] ss:$8 sps:$4 sm:$0xff]  }
  0x35   :  { %1235 = vmatprep.subr.bf16.mxu0 %v3561_v25  ;;  %v3651_v25 = vld [vmem:[%s5068_s3 + $0x184] ss:$8 sps:$4 sm:$0xff]  }
  0x36   :  { %1181 = vmatpush2.bf16.msra.mxu1 %v3606_v54  ;;  %v4015_v54 = vmov 0.0  }
  0x37   :  { %278 = vmatmul.mubr.bf16.vlgmr.msra.gmra.mxu0 %v3545_v26  ;;  %1182 = vmatprep.subr.bf16.mxu1 %v3610_v57  ;;  %v3649_v26 = vld [vmem:[%s5068_s3 + $0x180] ss:$8 sps:$4 sm:$0xff]  }
  0x38   :  { %287 = vmatprep.mubr.bf16.mxu0 %v4014_v1  ;;  %1236 = vmatpush1.bf16.msra.mxu0 %v3559_v28  ;;  %v108_v28 = vshrl.u32 %v107_v27, 7 }
  0x39   :  { %1237 = vmatprep.subr.bf16.mxu0 %v3567_v29 }
  0x3a   :  { %1183 = vmatpush2.bf16.msra.mxu1 %v3612_v58  ;;  %v4387_v29 = vsub.s32 1, %v108_v28  ;;  %v4389_v30 = vsub.s32 0, %v108_v28 }
  0x3b   :  { %1184 = vmatprep.subr.bf16.mxu1 %v3616_v60 }
  0x3c   :  { %1238 = vmatpush1.bf16.msra.mxu0 %v3565_v32  ;;  %v4395_v33 = vrot.slane %v105_v31, %v4387_v29 }
  0x3d   :  { %1239 = vmatprep.subr.bf16.mxu0 %v3573_v34 }
  0x3e   :  { %1185 = vmatpush2.bf16.msra.mxu1 %v3618_v63 }
  0x3f   :  { %288 = vmatmul.mubr.bf16.gmra.mxu0 %v3546_v35  ;;  %1186 = vmatprep.subr.bf16.mxu1 %v3622_v3  ;;  %v4398_v35 = vrot.slane %v105_v31, %v4389_v30 }
  0x40   :  { %297 = vmatprep.mubr.bf16.mxu0 %v4014_v1  ;;  %1240 = vmatpush1.bf16.msra.mxu0 %v3571_v37 }
  0x41   :  { %1241 = vmatprep.subr.bf16.mxu0 %v3579_v38 }
  0x42   :  { %1187 = vmatpush2.bf16.msra.mxu1 %v3624_v4  ;;  %v3652_v4 = vld [vmem:[%s5068_s3 + $0x260] ss:$8 sps:$4 sm:$0xff]  }
  0x43   :  { %1188 = vmatprep.subr.bf16.mxu1 %v3628_v13  ;;  %v3660_v13 = vld [vmem:[%s5068_s3 + $0x244] ss:$8 sps:$4 sm:$0xff]  }
  0x44   :  { %1242 = vmatpush1.bf16.msra.mxu0 %v3577_v41 }
  0x45   :  { %1243 = vmatprep.subr.bf16.mxu0 %v3585_v43 }
  0x46   :  { %1189 = vmatpush2.bf16.msra.mxu1 %v3630_v14 }
  0x47   :  { %298 = vmatmul.mubr.bf16.gmra.mxu0 %v3547_v44  ;;  %1190 = vmatprep.subr.bf16.mxu1 %v3634_v16 }
  0x48   :  { %307 = vmatprep.mubr.bf16.mxu0 %v4014_v1  ;;  %1244 = vmatpush1.bf16.msra.mxu0 %v3583_v46 }
  0x49   :  { %1245 = vmatprep.subr.bf16.mxu0 %v3591_v47 }
  0x4a   :  { %1191 = vmatpush2.bf16.msra.mxu1 %v3636_v17 }
  0x4b   :  { %1192 = vmatprep.subr.bf16.mxu1 %v3640_v20 }
  0x4c   :  { %1246 = vmatpush1.bf16.msra.mxu0 %v3589_v49 }
  0x4d   :  { %1247 = vmatprep.subr.bf16.mxu0 %v3597_v51 }
  0x4e   :  { %1193 = vmatpush2.bf16.msra.mxu1 %v3642_v21  ;;  %v3658_v21 = vld [vmem:[%s5068_s3 + $0x240] ss:$8 sps:$4 sm:$0xff]  }
  0x4f   :  { %308 = vmatmul.mubr.bf16.gmra.mxu0 %v3548_v53  ;;  %1308 = vmatprep.subr.bf16.mxu1 %v3648_v24  ;;  %v3663_v24 = vld [vmem:[%s5068_s3 + $0x234] ss:$8 sps:$4 sm:$0xff]  }
  0x50   :  { %317 = vmatprep.mubr.bf16.mxu0 %v4014_v1  ;;  %1248 = vmatpush1.bf16.msra.mxu0 %v3595_v55 }
  0x51   :  { %1249 = vmatprep.subr.bf16.mxu0 %v3603_v56  ;;  %v3646_v56 = vld [vmem:[%s5068_s3 + $0x270] ss:$8 sps:$4 sm:$0xff]  }
  0x54   :  { %1250 = vmatpush1.bf16.msra.mxu0 %v3601_v59  ;;  %v3654_v59 = vld [vmem:[%s5068_s3 + $0x264] ss:$8 sps:$4 sm:$0xff]  }
  0x55   :  { %1251 = vmatprep.subr.bf16.mxu0 %v3609_v61 }
  0x57   :  { %318 = vmatmul.mubr.bf16.gmra.mxu0 %v3549_v62 }
  0x58   :  { %327 = vmatprep.mubr.bf16.mxu0 %v4014_v1  ;;  %1252 = vmatpush2.bf16.msra.mxu0 %v3607_v0 }
  0x59   :  { %1253 = vmatprep.subr.bf16.mxu0 %v3615_v2 }
  0x5c   :  { %1254 = vmatpush2.bf16.msra.mxu0 %v3613_v5 }
  0x5d   :  { %1255 = vmatprep.subr.bf16.mxu0 %v3621_v6  ;;  %v3657_v6 = vld [vmem:[%s5068_s3 + $0x254] ss:$8 sps:$4 sm:$0xff]  }
  0x5f   :  { %328 = vmatmul.mubr.bf16.gmra.mxu0 %v3550_v7 }
  0x60   :  { %337 = vmatprep.mubr.bf16.mxu0 %v4014_v1  ;;  %1256 = vmatpush2.bf16.msra.mxu0 %v3619_v8 }
  0x61   :  { %1257 = vmatprep.subr.bf16.mxu0 %v3627_v9 }
  0x64   :  { %1258 = vmatpush2.bf16.msra.mxu0 %v3625_v10 }
  0x65   :  { %1259 = vmatprep.subr.bf16.mxu0 %v3633_v15 }
  0x67   :  { %338 = vmatmul.mubr.bf16.gmra.mxu0 %v3551_v11  ;;  %v3655_v11 = vld [vmem:[%s5068_s3 + $0x250] ss:$8 sps:$4 sm:$0xff]  }
  0x68   :  { %347 = vmatprep.mubr.bf16.mxu0 %v4014_v1  ;;  %v3631_v1 = vld [vmem:[%s5068_s3 + $0x1b0] ss:$8 sps:$4 sm:$0xff]  }
  0x69   :  { %1260 = vmatpush2.bf16.msra.mxu0 %v3631_v1 }
  0x6a   :  { %1261 = vmatprep.subr.bf16.mxu0 %v3639_v18 }
  0x6d   :  { %1262 = vmatpush2.bf16.msra.mxu0 %v3637_v19 }
  0x6e   :  { %1263 = vmatprep.subr.bf16.mxu0 %v3645_v22 }
  0x6f   :  { %348 = vmatmul.mubr.bf16.gmra.mxu0 %v3552_v12 }
  0x71   :  { %1264 = vmatpush2.bf16.msra.mxu0 %v3643_v23 }
  0x72   :  { %1265 = vmatprep.subr.bf16.mxu0 %v3651_v25 }
  0x75   :  { %1266 = vmatpush2.bf16.msra.mxu0 %v3649_v26 }
  0xf7   :  { %v279_v32 = vpop.f32.mrf.mxu0 }
  0xf8   :  { %v280_v42 = vadd.f32 %v279_v32, %v4398_v35 }
  0xf9   :  { %v281_v34 = vpop.f32.mrf.mxu0 }
  0xfa   :  { %v282_v38 = vadd.f32 %v281_v34, %v4395_v33  ;;  %v390_v52 = vmul.f32 0.2, %v280_v42  ;;  %vm358_vm4 = vcmp.ge.f32.partialorder %v280_v42, 0.0 }
  0xfb   :  { %v283_v36 = vpop.f32.mrf.mxu0 }
  0xfc   :  { %v284_v37 = vadd.f32 %v283_v36, %v4398_v35  ;;  %v391_v46 = vmul.f32 0.2, %v282_v38  ;;  %vm359_vm3 = vcmp.ge.f32.partialorder %v282_v38, 0.0  ;;  %v422_v0 = vsel %vm358_vm4, %v280_v42, %v390_v52  ;;  %v3664_v52 = vld [vmem:[%s5068_s3 + $0x220] ss:$8 sps:$4 sm:$0xff]  }
  0xfd   :  { %v285_v39 = vpop.f32.mrf.mxu0 }
  0xfe   :  { %vm360_vm0 = vcmp.ge.f32.partialorder %v284_v37, 0.0  ;;  %v392_v40 = vmul.f32 0.2, %v284_v37  ;;  %v286_v41 = vadd.f32 %v285_v39, %v4395_v33  ;;  %v423_v62 = vsel %vm359_vm3, %v282_v38, %v391_v46  ;;  %v3661_v39 = vld [vmem:[%s5068_s3 + $0x230] ss:$8 sps:$4 sm:$0xff]  }
  0xff   :  { %v289_v43 = vpop.f32.mrf.mxu0 }
 0x100   :  { %v393_v44 = vmul.f32 0.2, %v286_v41  ;;  %v290_v45 = vadd.f32 %v289_v43, %v4398_v35  ;;  %vm361_vm1 = vcmp.ge.f32.partialorder %v286_v41, 0.0  ;;  %v4405_v48 = vsel %vm360_vm0, %v284_v37, %v392_v40  ;;  %v3666_v43 = vld [vmem:[%s5068_s3 + $0x224] ss:$8 sps:$4 sm:$0xff]  }
 0x101   :  { %v291_v47 = vpop.f32.mrf.mxu0  ;;  %v550_v58 = vpack.c.bf16 %v4405_v48, %v4015_v54 }
 0x102   :  { %vm362_vm2 = vcmp.ge.f32.partialorder %v290_v45, 0.0  ;;  %v394_v49 = vmul.f32 0.2, %v290_v45  ;;  %v292_v50 = vadd.f32 %v291_v47, %v4395_v33  ;;  %v4408_v51 = vsel %vm361_vm1, %v286_v41, %v393_v44 }
 0x103   :  { %v293_v53 = vpop.f32.mrf.mxu0  ;;  %v551_v55 = vpack.c.bf16 %v4408_v51, %v4015_v54 }
 0x104   :  { %vm363_vm5 = vcmp.ge.f32.partialorder %v292_v50, 0.0  ;;  %v395_v57 = vmul.f32 0.2, %v292_v50  ;;  %v426_v60 = vsel %vm362_vm2, %v290_v45, %v394_v49  ;;  %v294_v9 = vadd.f32 %v293_v53, %v4398_v35 }
 0x105   :  { %v295_v61 = vpop.f32.mrf.mxu0  ;;  %1194 = vmatprep.mubr.bf16.mxu1 %v551_v55  ;;  %v552_v5 = vpack.c.bf16 %v426_v60, %v422_v0 }
 0x106   :  { %1195 = vmatmul.mubr.bf16.vlgmr.msra.gmra.mxu1 %v550_v58  ;;  %v427_v63 = vsel %vm363_vm5, %v292_v50, %v395_v57  ;;  %v296_v7 = vadd.f32 %v295_v61, %v4395_v33  ;;  %v396_v18 = vmul.f32 0.2, %v294_v9  ;;  %vm364_vm8 = vcmp.ge.f32.partialorder %v294_v9, 0.0  ;;  %v3667_v61 = vld [vmem:[%s5068_s3 + $0x210] ss:$8 sps:$4 sm:$0xff]  }
 0x107   :  { %1309 = vmatpush1.bf16.msra.mxu1 %v3646_v56  ;;  %v299_v2 = vpop.f32.mrf.mxu0  ;;  %v553_v3 = vpack.c.bf16 %v427_v63, %v423_v62  ;;  %v3669_v56 = vld [vmem:[%s5068_s3 + $0x214] ss:$8 sps:$4 sm:$0xff]   ;;  %v3672_v63 = vld [vmem:[%s5068_s3 + $0x204] ss:$8 sps:$4 sm:$0xff]  }
 0x108   :  { %1310 = vmatprep.subr.bf16.mxu1 %v3654_v59  ;;  %v397_v14 = vmul.f32 0.2, %v296_v7  ;;  %vm365_vm6 = vcmp.ge.f32.partialorder %v296_v7, 0.0  ;;  %v300_v19 = vadd.f32 %v299_v2, %v4398_v35  ;;  %v4459_v40 = vsel %vm364_vm8, %v294_v9, %v396_v18  ;;  %v3670_v9 = vld [vmem:[%s5068_s3 + $0x200] ss:$8 sps:$4 sm:$0xff]  }
 0x109   :  { %v301_v8 = vpop.f32.mrf.mxu0  ;;  %1267 = vmatprep.mubr.bf16.mxu0 %v553_v3 }
 0x10a   :  { %1268 = vmatmul.mubr.bf16.vlgmr.msra.gmra.mxu0 %v552_v5  ;;  %v302_v15 = vadd.f32 %v301_v8, %v4395_v33  ;;  %v4445_v25 = vsel %vm365_vm6, %v296_v7, %v397_v14  ;;  %v398_v36 = vmul.f32 0.2, %v300_v19  ;;  %vm366_vm12 = vcmp.ge.f32.partialorder %v300_v19, 0.0 }
 0x10b   :  { %1311 = vmatpush1.bf16.msra.mxu1 %v3652_v4  ;;  %v303_v10 = vpop.f32.mrf.mxu0 }
 0x10c   :  { %v304_v12 = vadd.f32 %v303_v10, %v4398_v35  ;;  %1312 = vmatprep.subr.bf16.mxu1 %v3657_v6  ;;  %v399_v26 = vmul.f32 0.2, %v302_v15  ;;  %vm367_vm11 = vcmp.ge.f32.partialorder %v302_v15, 0.0  ;;  %v430_v53 = vsel %vm366_vm12, %v300_v19, %v398_v36 }
 0x10d   :  { %v305_v1 = vpop.f32.mrf.mxu0 }
 0x10e   :  { %vm368_vm7 = vcmp.ge.f32.partialorder %v304_v12, 0.0  ;;  %v400_v16 = vmul.f32 0.2, %v304_v12  ;;  %v306_v17 = vadd.f32 %v305_v1, %v4395_v33  ;;  %v431_v46 = vsel %vm367_vm11, %v302_v15, %v399_v26 }
 0x10f   :  { %1313 = vmatpush1.bf16.msra.mxu1 %v3655_v11  ;;  %v309_v20 = vpop.f32.mrf.mxu0 }
 0x110   :  { %vm369_vm9 = vcmp.ge.f32.partialorder %v306_v17, 0.0  ;;  %v401_v22 = vmul.f32 0.2, %v306_v17  ;;  %v310_v23 = vadd.f32 %v309_v20, %v4398_v35  ;;  %1314 = vmatprep.subr.bf16.mxu1 %v3660_v13  ;;  %v4448_v28 = vsel %vm368_vm7, %v304_v12, %v400_v16  ;;  %v3675_v12 = vld [vmem:[%s5068_s3 + $0x2f4] ss:$8 sps:$4 sm:$0xff]  }
 0x111   :  { %v311_v27 = vpop.f32.mrf.mxu0  ;;  %v556_v42 = vpack.c.bf16 %v4448_v28, %v4459_v40 }
 0x112   :  { %vm370_vm10 = vcmp.ge.f32.partialorder %v310_v23, 0.0  ;;  %v402_v31 = vmul.f32 0.2, %v310_v23  ;;  %v312_v32 = vadd.f32 %v311_v27, %v4395_v33  ;;  %v4451_v34 = vsel %vm369_vm9, %v306_v17, %v401_v22  ;;  %v3673_v22 = vld [vmem:[%s5068_s3 + $0x2f0] ss:$8 sps:$4 sm:$0xff]  }
 0x113   :  { %1315 = vmatpush1.bf16.msra.mxu1 %v3658_v21  ;;  %v313_v37 = vpop.f32.mrf.mxu0  ;;  %v557_v38 = vpack.c.bf16 %v4451_v34, %v4445_v25  ;;  %v3678_v27 = vld [vmem:[%s5068_s3 + $0x2e4] ss:$8 sps:$4 sm:$0xff]  }
 0x114   :  { %vm371_vm13 = vcmp.ge.f32.partialorder %v312_v32, 0.0  ;;  %v403_v41 = vmul.f32 0.2, %v312_v32  ;;  %1316 = vmatprep.subr.bf16.mxu1 %v3663_v24  ;;  %v434_v45 = vsel %vm370_vm10, %v310_v23, %v402_v31  ;;  %v314_v59 = vadd.f32 %v313_v37, %v4398_v35 }
 0x115   :  { %v315_v44 = vpop.f32.mrf.mxu0  ;;  %1204 = vmatprep.mubr.bf16.mxu1 %v557_v38  ;;  %v558_v55 = vpack.c.bf16 %v434_v45, %v430_v53  ;;  %v3684_v53 = vld [vmem:[%s5068_s3 + $0x2c4] ss:$8 sps:$4 sm:$0xff]  }
 0x116   :  { %1205 = vmatmul.mubr.bf16.gmra.mxu1 %v556_v42  ;;  %v435_v47 = vsel %vm371_vm13, %v312_v32, %v403_v41  ;;  %v316_v57 = vadd.f32 %v315_v44, %v4395_v33  ;;  %v404_v6 = vmul.f32 0.2, %v314_v59  ;;  %vm372_vm0 = vcmp.ge.f32.partialorder %v314_v59, 0.0  ;;  %v3676_v41 = vld [vmem:[%s5068_s3 + $0x2e0] ss:$8 sps:$4 sm:$0xff]  }
 0x117   :  { %1317 = vmatpush1.bf16.msra.mxu1 %v3661_v39  ;;  %v319_v49 = vpop.f32.mrf.mxu0  ;;  %v559_v50 = vpack.c.bf16 %v435_v47, %v431_v46  ;;  %v3681_v44 = vld [vmem:[%s5068_s3 + $0x2d4] ss:$8 sps:$4 sm:$0xff]  }
 0x118   :  { %1318 = vmatprep.subr.bf16.mxu1 %v3666_v43  ;;  %v405_v0 = vmul.f32 0.2, %v316_v57  ;;  %vm373_vm14 = vcmp.ge.f32.partialorder %v316_v57, 0.0  ;;  %v320_v7 = vadd.f32 %v319_v49, %v4398_v35  ;;  %v4509_v23 = vsel %vm372_vm0, %v314_v59, %v404_v6 }
 0x119   :  { %v321_v58 = vpop.f32.mrf.mxu0  ;;  %1277 = vmatprep.mubr.bf16.mxu0 %v559_v50  ;;  %v3679_v50 = vld [vmem:[%s5068_s3 + $0x2d0] ss:$8 sps:$4 sm:$0xff]  }
 0x11a   :  { %1278 = vmatmul.mubr.bf16.gmra.mxu0 %v558_v55  ;;  %v322_v2 = vadd.f32 %v321_v58, %v4395_v33  ;;  %v4495_v15 = vsel %vm373_vm14, %v316_v57, %v405_v0  ;;  %v406_v19 = vmul.f32 0.2, %v320_v7  ;;  %vm374_vm4 = vcmp.ge.f32.partialorder %v320_v7, 0.0 }
 0x11b   :  { %1319 = vmatpush1.bf16.msra.mxu1 %v3664_v52  ;;  %v323_v60 = vpop.f32.mrf.mxu0 }
 0x11c   :  { %v324_v62 = vadd.f32 %v323_v60, %v4398_v35  ;;  %1320 = vmatprep.subr.bf16.mxu1 %v3669_v56  ;;  %v407_v13 = vmul.f32 0.2, %v322_v2  ;;  %vm375_vm3 = vcmp.ge.f32.partialorder %v322_v2, 0.0  ;;  %v438_v42 = vsel %vm374_vm4, %v320_v7, %v406_v19  ;;  %v3690_v19 = vld [vmem:[%s5068_s3 + $0x2a4] ss:$8 sps:$4 sm:$0xff]  }
 0x11d   :  { %v325_v3 = vpop.f32.mrf.mxu0 }
 0x11e   :  { %vm376_vm15 = vcmp.ge.f32.partialorder %v324_v62, 0.0  ;;  %v408_v4 = vmul.f32 0.2, %v324_v62  ;;  %v326_v5 = vadd.f32 %v325_v3, %v4395_v33  ;;  %v439_v36 = vsel %vm375_vm3, %v322_v2, %v407_v13  ;;  %v3687_v3 = vld [vmem:[%s5068_s3 + $0x2b4] ss:$8 sps:$4 sm:$0xff]  }
 0x11f   :  { %1321 = vmatpush1.bf16.msra.mxu1 %v3667_v61  ;;  %v329_v8 = vpop.f32.mrf.mxu0  ;;  %v3685_v13 = vld [vmem:[%s5068_s3 + $0x2b0] ss:$8 sps:$4 sm:$0xff]  }
 0x120   :  { %vm377_vm1 = vcmp.ge.f32.partialorder %v326_v5, 0.0  ;;  %v409_v10 = vmul.f32 0.2, %v326_v5  ;;  %v330_v11 = vadd.f32 %v329_v8, %v4398_v35  ;;  %1322 = vmatprep.subr.bf16.mxu1 %v3672_v63  ;;  %v4498_v1 = vsel %vm376_vm15, %v324_v62, %v408_v4  ;;  %v3682_v63 = vld [vmem:[%s5068_s3 + $0x2c0] ss:$8 sps:$4 sm:$0xff]  }
 0x121   :  { %v331_v14 = vpop.f32.mrf.mxu0  ;;  %v562_v26 = vpack.c.bf16 %v4498_v1, %v4509_v23 }
 0x122   :  { %vm378_vm2 = vcmp.ge.f32.partialorder %v330_v11, 0.0  ;;  %v410_v16 = vmul.f32 0.2, %v330_v11  ;;  %v332_v17 = vadd.f32 %v331_v14, %v4395_v33  ;;  %v4501_v18 = vsel %vm377_vm1, %v326_v5, %v409_v10 }
 0x123   :  { %1323 = vmatpush1.bf16.msra.mxu1 %v3670_v9  ;;  %v333_v20 = vpop.f32.mrf.mxu0  ;;  %v563_v21 = vpack.c.bf16 %v4501_v18, %v4495_v15 }
 0x124   :  { %vm379_vm5 = vcmp.ge.f32.partialorder %v332_v17, 0.0  ;;  %v411_v24 = vmul.f32 0.2, %v332_v17  ;;  %1324 = vmatprep.subr.bf16.mxu1 %v3675_v12  ;;  %v442_v32 = vsel %vm378_vm2, %v330_v11, %v410_v16  ;;  %v334_v47 = vadd.f32 %v333_v20, %v4398_v35 }
 0x125   :  { %v335_v31 = vpop.f32.mrf.mxu0  ;;  %1214 = vmatprep.mubr.bf16.mxu1 %v563_v21  ;;  %v564_v43 = vpack.c.bf16 %v442_v32, %v438_v42  ;;  %v555_v20 = vpack.c.bf16 %v4445_v25, %v4408_v51  ;;  %v3693_v51 = vld [vmem:[%s5068_s3 + $0x294] ss:$8 sps:$4 sm:$0xff]   ;;  %v3691_v25 = vld [vmem:[%s5068_s3 + $0x290] ss:$8 sps:$4 sm:$0xff]  }
 0x126   :  { %1215 = vmatmul.mubr.bf16.gmra.mxu1 %v562_v26  ;;  %v443_v37 = vsel %vm379_vm5, %v332_v17, %v411_v24  ;;  %v336_v45 = vadd.f32 %v335_v31, %v4395_v33  ;;  %v412_v60 = vmul.f32 0.2, %v334_v47  ;;  %vm380_vm8 = vcmp.ge.f32.partialorder %v334_v47, 0.0 }
 0x127   :  { %1325 = vmatpush2.bf16.msra.mxu1 %v3673_v22  ;;  %v339_v38 = vpop.f32.mrf.mxu0  ;;  %v565_v39 = vpack.c.bf16 %v443_v37, %v439_v36  ;;  %v3696_v36 = vld [vmem:[%s5068_s3 + $0x284] ss:$8 sps:$4 sm:$0xff]   ;;  %v3694_v37 = vld [vmem:[%s5068_s3 + $0x280] ss:$8 sps:$4 sm:$0xff]  }
 0x128   :  { %1326 = vmatprep.subr.bf16.mxu1 %v3678_v27  ;;  %v413_v55 = vmul.f32 0.2, %v336_v45  ;;  %vm381_vm6 = vcmp.ge.f32.partialorder %v336_v45, 0.0  ;;  %v340_v61 = vadd.f32 %v339_v38, %v4398_v35  ;;  %v444_v14 = vsel %vm380_vm8, %v334_v47, %v412_v60  ;;  %v3688_v27 = vld [vmem:[%s5068_s3 + $0x2a0] ss:$8 sps:$4 sm:$0xff]  }
 0x129   :  { %v341_v46 = vpop.f32.mrf.mxu0  ;;  %1287 = vmatprep.mubr.bf16.mxu0 %v565_v39  ;;  %v554_v39 = vpack.c.bf16 %v4459_v40, %v4405_v48  ;;  %v566_v40 = vpack.c.bf16 %v444_v14, %v4498_v1  ;;  %v3700_v1 = vld [vmem:[%s5072_s7 + $0x60] ss:$8 sps:$4 sm:$0xff]   ;;  %v3715_v60 = vld [vmem:[%s5072_s7 + $0x150] ss:$8 sps:$4 sm:$0xff]  }
 0x12a   :  { %1288 = vmatmul.mubr.bf16.gmra.mxu0 %v564_v43  ;;  %v342_v56 = vadd.f32 %v341_v46, %v4395_v33  ;;  %v445_v6 = vsel %vm381_vm6, %v336_v45, %v413_v55  ;;  %v414_v11 = vmul.f32 0.2, %v340_v61  ;;  %vm382_vm12 = vcmp.ge.f32.partialorder %v340_v61, 0.0  ;;  %v3711_v55 = vld [vmem:[%s5072_s7 + $0x164] ss:$8 sps:$4 sm:$0xff]  }
 0x12b   :  { %1327 = vmatpush2.bf16.msra.mxu1 %v3676_v41  ;;  %v343_v49 = vpop.f32.mrf.mxu0  ;;  %v561_v41 = vpack.c.bf16 %v4495_v15, %v4451_v34  ;;  %v567_v45 = vpack.c.bf16 %v445_v6, %v4501_v18 }
 0x12c   :  { %v344_v52 = vadd.f32 %v343_v49, %v4398_v35  ;;  %1328 = vmatprep.subr.bf16.mxu1 %v3681_v44  ;;  %v415_v4 = vmul.f32 0.2, %v342_v56  ;;  %vm383_vm11 = vcmp.ge.f32.partialorder %v342_v56, 0.0  ;;  %v446_v31 = vsel %vm382_vm12, %v340_v61, %v414_v11  ;;  %v3720_v61 = vld [vmem:[%s5072_s7 + $0x34] ss:$8 sps:$4 sm:$0xff]  }
 0x12d   :  { %v345_v57 = vpop.f32.mrf.mxu0  ;;  %v560_v44 = vpack.c.bf16 %v4509_v23, %v4448_v28  ;;  %v3697_v28 = vld [vmem:[%s5072_s7 + $0x70] ss:$8 sps:$4 sm:$0xff]   ;;  %v3705_v23 = vld [vmem:[%s5072_s7 + $0x174] ss:$8 sps:$4 sm:$0xff]   ;;  %v3738_v11 = vld [vmem:[%s5072_s7 + $0x4] ss:$8 sps:$4 sm:$0xff]  }
 0x12e   :  { %vm384_vm7 = vcmp.ge.f32.partialorder %v344_v52, 0.0  ;;  %v416_v58 = vmul.f32 0.2, %v344_v52  ;;  %v346_v59 = vadd.f32 %v345_v57, %v4395_v33  ;;  %v447_v22 = vsel %vm383_vm11, %v342_v56, %v415_v4  ;;  %v3709_v56 = vld [vmem:[%s5072_s7 + $0x160] ss:$8 sps:$4 sm:$0xff]  }
 0x12f   :  { %1329 = vmatpush2.bf16.msra.mxu1 %v3679_v50  ;;  %v349_v62 = vpop.f32.mrf.mxu0  ;;  %v3703_v50 = vld [vmem:[%s5072_s7 + $0x170] ss:$8 sps:$4 sm:$0xff]   ;;  %v3712_v57 = vld [vmem:[%s5072_s7 + $0x40] ss:$8 sps:$4 sm:$0xff]   ;;  %v3729_v4 = vld [vmem:[%s5072_s7 + $0x134] ss:$8 sps:$4 sm:$0xff]  }
 0x130   :  { %vm385_vm9 = vcmp.ge.f32.partialorder %v346_v59, 0.0  ;;  %v417_v0 = vmul.f32 0.2, %v346_v59  ;;  %v350_v2 = vadd.f32 %v349_v62, %v4398_v35  ;;  %1330 = vmatprep.subr.bf16.mxu1 %v3684_v53  ;;  %v4546_v7 = vsel %vm384_vm7, %v344_v52, %v416_v58  ;;  %v3708_v52 = vld [vmem:[%s5072_s7 + $0x54] ss:$8 sps:$4 sm:$0xff]  }
 0x131   :  { %v351_v5 = vpop.f32.mrf.mxu0  ;;  %v568_v17 = vpack.c.bf16 %v4546_v7, %v444_v14  ;;  %v3706_v53 = vld [vmem:[%s5072_s7 + $0x50] ss:$8 sps:$4 sm:$0xff]   ;;  %v3714_v58 = vld [vmem:[%s5072_s7 + $0x44] ss:$8 sps:$4 sm:$0xff]   ;;  %v3744_v14 = vld [vmem:[%s5072_s7 + $0xf4] ss:$8 sps:$4 sm:$0xff]  }
 0x132   :  { %vm386_vm10 = vcmp.ge.f32.partialorder %v350_v2, 0.0  ;;  %v418_v8 = vmul.f32 0.2, %v350_v2  ;;  %v352_v9 = vadd.f32 %v351_v5, %v4395_v33  ;;  %v449_v10 = vsel %vm385_vm9, %v346_v59, %v417_v0  ;;  %v3717_v59 = vld [vmem:[%s5072_s7 + $0x154] ss:$8 sps:$4 sm:$0xff]  }
 0x133   :  { %1331 = vmatpush2.bf16.msra.mxu1 %v3682_v63  ;;  %v569_v12 = vpack.c.bf16 %v449_v10, %v445_v6  ;;  %v353_v38 = vpop.f32.mrf.mxu0  ;;  %v3718_v62 = vld [vmem:[%s5072_s7 + $0x30] ss:$8 sps:$4 sm:$0xff]   ;;  %v3723_v63 = vld [vmem:[%s5072_s7 + $0x144] ss:$8 sps:$4 sm:$0xff]   ;;  %v3721_v0 = vld [vmem:[%s5072_s7 + $0x140] ss:$8 sps:$4 sm:$0xff]  }
 0x134   :  { %vm387_vm13 = vcmp.ge.f32.partialorder %v352_v9, 0.0  ;;  %v419_v16 = vmul.f32 0.2, %v352_v9  ;;  %1332 = vmatprep.subr.bf16.mxu1 %v3687_v3  ;;  %v450_v21 = vsel %vm386_vm10, %v350_v2, %v418_v8  ;;  %v354_v47 = vadd.f32 %v353_v38, %v4398_v35  ;;  %v3702_v35 = vld [vmem:[%s5072_s7 + $0x64] ss:$8 sps:$4 sm:$0xff]  }
 0x135   :  { %1224 = vmatprep.mubr.bf16.mxu1 %v569_v12  ;;  %v570_v32 = vpack.c.bf16 %v450_v21, %v446_v31  ;;  %v355_v42 = vpop.f32.mrf.mxu0  ;;  %v3726_v2 = vld [vmem:[%s5072_s7 + $0x24] ss:$8 sps:$4 sm:$0xff]   ;;  %v3724_v3 = vld [vmem:[%s5072_s7 + $0x20] ss:$8 sps:$4 sm:$0xff]   ;;  %v3727_v5 = vld [vmem:[%s5072_s7 + $0x130] ss:$8 sps:$4 sm:$0xff]  }
 0x136   :  { %1225 = vmatmul.mubr.bf16.gmra.mxu1 %v568_v17  ;;  %v451_v24 = vsel %vm387_vm13, %v352_v9, %v419_v16  ;;  %v356_v43 = vadd.f32 %v355_v42, %v4395_v33  ;;  %v420_v34 = vmul.f32 0.2, %v354_v47  ;;  %vm388_vm15 = vcmp.ge.f32.partialorder %v354_v47, 0.0  ;;  %v3699_v33 = vld [vmem:[%s5072_s7 + $0x74] ss:$8 sps:$4 sm:$0xff]  }
 0x137   :  { %1333 = vmatpush2.bf16.msra.mxu1 %v3685_v13  ;;  %1340 = vmatprep.mubr.bf16.mxu1 %v555_v20  ;;  %v571_v26 = vpack.c.bf16 %v451_v24, %v447_v22  ;;  %v3732_v6 = vld [vmem:[%s5072_s7 + $0x14] ss:$8 sps:$4 sm:$0xff]   ;;  %v3735_v8 = vld [vmem:[%s5072_s7 + $0x124] ss:$8 sps:$4 sm:$0xff]   ;;  %v3733_v9 = vld [vmem:[%s5072_s7 + $0x120] ss:$8 sps:$4 sm:$0xff]  }
 0x138   :  { %1334 = vmatprep.subr.bf16.mxu1 %v3690_v19  ;;  %v421_v46 = vmul.f32 0.2, %v356_v43  ;;  %vm389_vm14 = vcmp.ge.f32.partialorder %v356_v43, 0.0  ;;  %2133 = vmatprep.subr.bf16.mxu0 %v3699_v33  ;;  %v452_v18 = vsel %vm388_vm15, %v354_v47, %v420_v34  ;;  %v3741_v12 = vld [vmem:[%s5072_s7 + $0x114] ss:$8 sps:$4 sm:$0xff]  }
 0x139   :  { %1297 = vmatprep.mubr.bf16.mxu0 %v571_v26  ;;  %2134 = vmatpush1.bf16.msra.mxu0 %v3697_v28  ;;  %v572_v49 = vpack.c.bf16 %v452_v18, %v4546_v7  ;;  %v3730_v7 = vld [vmem:[%s5072_s7 + $0x10] ss:$8 sps:$4 sm:$0xff]   ;;  %v3747_v17 = vld [vmem:[%s5072_s7 + $0x104] ss:$8 sps:$4 sm:$0xff]   ;;  %v3745_v19 = vld [vmem:[%s5072_s7 + $0x100] ss:$8 sps:$4 sm:$0xff]  }
 0x13a   :  { %1298 = vmatmul.mubr.bf16.gmra.mxu0 %v570_v32  ;;  %v453_v48 = vsel %vm389_vm14, %v356_v43, %v421_v46  ;;  %2135 = vmatprep.subr.bf16.mxu0 %v3702_v35  ;;  %v3739_v13 = vld [vmem:[%s5072_s7 + $0x110] ss:$8 sps:$4 sm:$0xff]   ;;  %v3750_v20 = vld [vmem:[%s5072_s7 + $0xe4] ss:$8 sps:$4 sm:$0xff]   ;;  %v3748_v21 = vld [vmem:[%s5072_s7 + $0xe0] ss:$8 sps:$4 sm:$0xff]  }
 0x13b   :  { %1335 = vmatpush2.bf16.msra.mxu1 %v3688_v27  ;;  %v573_v15 = vpack.c.bf16 %v453_v48, %v449_v10  ;;  %v3736_v10 = vld [vmem:[%s5072_s7] ss:$8 sps:$4 sm:$0xff]   ;;  %v3742_v16 = vld [vmem:[%s5072_s7 + $0xf0] ss:$8 sps:$4 sm:$0xff]   ;;  %v3753_v22 = vld [vmem:[%s5072_s7 + $0x1f4] ss:$8 sps:$4 sm:$0xff]  }
 0x13c   :  { %1336 = vmatprep.subr.bf16.mxu1 %v3693_v51  ;;  %v3751_v24 = vld [vmem:[%s5072_s7 + $0x1f0] ss:$8 sps:$4 sm:$0xff]   ;;  %v3756_v26 = vld [vmem:[%s5072_s7 + $0xd4] ss:$8 sps:$4 sm:$0xff]   ;;  %v3759_v31 = vld [vmem:[%s5072_s7 + $0x1e4] ss:$8 sps:$4 sm:$0xff]  }
 0x13d   :  { %2136 = vmatpush1.bf16.msra.mxu0 %v3700_v1  ;;  %v3754_v27 = vld [vmem:[%s5072_s7 + $0xd0] ss:$8 sps:$4 sm:$0xff]   ;;  %v3757_v32 = vld [vmem:[%s5072_s7 + $0x1e0] ss:$8 sps:$4 sm:$0xff]   ;;  %v3768_v38 = vld [vmem:[%s5072_s7 + $0xb4] ss:$8 sps:$4 sm:$0xff]  }
 0x13e   :  { %2137 = vmatprep.subr.bf16.mxu0 %v3708_v52  ;;  %v3760_v51 = vld [vmem:[%s5072_s7 + $0xc0] ss:$8 sps:$4 sm:$0xff]   ;;  %v3774_v43 = vld [vmem:[%s5072_s7 + $0xa4] ss:$8 sps:$4 sm:$0xff]   ;;  %v3775_v46 = vld [vmem:[%s5072_s7 + $0x1b0] ss:$8 sps:$4 sm:$0xff]  }
 0x13f   :  { %1337 = vmatpush2.bf16.msra.mxu1 %v3691_v25  ;;  %v3762_v25 = vld [vmem:[%s5072_s7 + $0xc4] ss:$8 sps:$4 sm:$0xff]   ;;  %v3769_v42 = vld [vmem:[%s5072_s7 + $0x1c0] ss:$8 sps:$4 sm:$0xff]   ;;  %v3780_v47 = vld [vmem:[%s5072_s7 + $0x94] ss:$8 sps:$4 sm:$0xff]  }
 0x140   :  { %1338 = vmatprep.subr.bf16.mxu1 %v3696_v36  ;;  %v3765_v36 = vld [vmem:[%s5072_s7 + $0x1d4] ss:$8 sps:$4 sm:$0xff]   ;;  %v3778_v48 = vld [vmem:[%s5072_s7 + $0x90] ss:$8 sps:$4 sm:$0xff]   ;;  %v3781_v34 = vld [vmem:[%s5072_s7 + $0x1a0] ss:$8 sps:$4 sm:$0xff]  }
 0x141   :  { %2138 = vmatpush1.bf16.msra.mxu0 %v3706_v53  ;;  %v3784_v33 = vld [vmem:[%s5072_s7 + $0x80] ss:$8 sps:$4 sm:$0xff]   ;;  %v3789_v28 = vld [vmem:[%s5072_s7 + $0x194] ss:$8 sps:$4 sm:$0xff]   ;;  %v3787_v18 = vld [vmem:[%s5072_s7 + $0x190] ss:$8 sps:$4 sm:$0xff]  }
 0x142   :  { %2139 = vmatprep.subr.bf16.mxu0 %v3714_v58  ;;  %v3792_v35 = vld [vmem:[%s5072_s7 + $0x274] ss:$8 sps:$4 sm:$0xff]   ;;  %v3795_v1 = vld [vmem:[%s5072_s7 + $0x184] ss:$8 sps:$4 sm:$0xff]  }
 0x143   :  { %1339 = vmatpush2.bf16.msra.mxu1 %v3694_v37  ;;  %v3763_v37 = vld [vmem:[%s5072_s7 + $0x1d0] ss:$8 sps:$4 sm:$0xff]  }
 0x144   :  { %2186 = vmatprep.subr.bf16.mxu1 %v3705_v23  ;;  %v3793_v23 = vld [vmem:[%s5072_s7 + $0x180] ss:$8 sps:$4 sm:$0xff]  }
 0x145   :  { %2140 = vmatpush1.bf16.msra.mxu0 %v3712_v57 }
 0x146   :  { %1341 = vmatmul.mubr.bf16.vlgmr.msra.gmra.mxu1 %v554_v39  ;;  %2141 = vmatprep.subr.bf16.mxu0 %v3720_v61  ;;  %v3766_v39 = vld [vmem:[%s5072_s7 + $0xb0] ss:$8 sps:$4 sm:$0xff]  }
 0x147   :  { %1350 = vmatprep.mubr.bf16.mxu1 %v561_v41  ;;  %2187 = vmatpush1.bf16.msra.mxu1 %v3703_v50  ;;  %v3771_v41 = vld [vmem:[%s5072_s7 + $0x1c4] ss:$8 sps:$4 sm:$0xff]  }
 0x148   :  { %2188 = vmatprep.subr.bf16.mxu1 %v3711_v55 }
 0x149   :  { %2142 = vmatpush1.bf16.msra.mxu0 %v3718_v62 }
 0x14a   :  { %2143 = vmatprep.subr.bf16.mxu0 %v3726_v2 }
 0x14b   :  { %2189 = vmatpush1.bf16.msra.mxu1 %v3709_v56 }
 0x14c   :  { %2190 = vmatprep.subr.bf16.mxu1 %v3717_v59 }
 0x14d   :  { %2144 = vmatpush1.bf16.msra.mxu0 %v3724_v3 }
 0x14e   :  { %1351 = vmatmul.mubr.bf16.gmra.mxu1 %v560_v44  ;;  %2145 = vmatprep.subr.bf16.mxu0 %v3732_v6  ;;  %v3772_v44 = vld [vmem:[%s5072_s7 + $0xa0] ss:$8 sps:$4 sm:$0xff]  }
 0x14f   :  { %1360 = vmatprep.mubr.bf16.mxu1 %v567_v45  ;;  %2191 = vmatpush1.bf16.msra.mxu1 %v3715_v60  ;;  %v3777_v45 = vld [vmem:[%s5072_s7 + $0x1b4] ss:$8 sps:$4 sm:$0xff]  }
 0x150   :  { %2192 = vmatprep.subr.bf16.mxu1 %v3723_v63 }
 0x151   :  { %2146 = vmatpush1.bf16.msra.mxu0 %v3730_v7 }
 0x152   :  { %2147 = vmatprep.subr.bf16.mxu0 %v3738_v11 }
 0x153   :  { %2193 = vmatpush1.bf16.msra.mxu1 %v3721_v0 }
 0x154   :  { %2194 = vmatprep.subr.bf16.mxu1 %v3729_v4 }
 0x155   :  { %2148 = vmatpush1.bf16.msra.mxu0 %v3736_v10 }
 0x156   :  { %1361 = vmatmul.mubr.bf16.gmra.mxu1 %v566_v40  ;;  %2149 = vmatprep.subr.bf16.mxu0 %v3744_v14  ;;  %v3783_v40 = vld [vmem:[%s5072_s7 + $0x1a4] ss:$8 sps:$4 sm:$0xff]  }
 0x157   :  { %1370 = vmatprep.mubr.bf16.mxu1 %v573_v15  ;;  %2195 = vmatpush1.bf16.msra.mxu1 %v3727_v5  ;;  %v3786_v15 = vld [vmem:[%s5072_s7 + $0x84] ss:$8 sps:$4 sm:$0xff]   ;;  %v670_v5 = vld [vmem:[%s5069_s4] sm:$0x3] }
 0x158   :  { %2196 = vmatprep.subr.bf16.mxu1 %v3735_v8  ;;  %v4798_v8 = vrot.slane %v670_v5, %v4389_v30  ;;  %v4801_v11 = vrot.slane %v670_v5, %v4387_v29 }
 0x159   :  { %2150 = vmatpush2.bf16.msra.mxu0 %v3742_v16 }
 0x15a   :  { %2151 = vmatprep.subr.bf16.mxu0 %v3750_v20 }
 0x15b   :  { %2197 = vmatpush1.bf16.msra.mxu1 %v3733_v9 }
 0x15c   :  { %2198 = vmatprep.subr.bf16.mxu1 %v3741_v12 }
 0x15d   :  { %2152 = vmatpush2.bf16.msra.mxu0 %v3748_v21 }
 0x15e   :  { %1371 = vmatmul.mubr.bf16.gmra.mxu1 %v572_v49  ;;  %2153 = vmatprep.subr.bf16.mxu0 %v3756_v26 }
 0x15f   :  { %2199 = vmatpush1.bf16.msra.mxu1 %v3739_v13 }
 0x160   :  { %2200 = vmatprep.subr.bf16.mxu1 %v3747_v17 }
 0x161   :  { %2154 = vmatpush2.bf16.msra.mxu0 %v3754_v27 }
 0x162   :  { %2155 = vmatprep.subr.bf16.mxu0 %v3762_v25 }
 0x163   :  { %2201 = vmatpush1.bf16.msra.mxu1 %v3745_v19 }
 0x164   :  { %2202 = vmatprep.subr.bf16.mxu1 %v3753_v22 }
 0x165   :  { %2156 = vmatpush2.bf16.msra.mxu0 %v3760_v51 }
 0x166   :  { %2157 = vmatprep.subr.bf16.mxu0 %v3768_v38 }
 0x167   :  { %2203 = vmatpush2.bf16.msra.mxu1 %v3751_v24  ;;  %v1429_v24 = vld [vmem:[%s5070_s5] sm:$0x3] }
 0x168   :  { %2204 = vmatprep.subr.bf16.mxu1 %v3759_v31  ;;  %v4824_v38 = vrot.slane %v1429_v24, %v4389_v30 }
 0x169   :  { %2158 = vmatpush2.bf16.msra.mxu0 %v3766_v39 }
 0x16a   :  { %2159 = vmatprep.subr.bf16.mxu0 %v3774_v43 }
 0x16b   :  { %2205 = vmatpush2.bf16.msra.mxu1 %v3757_v32  ;;  %v1457_v32 = vld [vmem:[%s5071_s6] sm:$0x3] }
 0x16c   :  { %2206 = vmatprep.subr.bf16.mxu1 %v3765_v36  ;;  %v4828_v43 = vrot.slane %v1457_v32, %v4389_v30 }
 0x16d   :  { %2160 = vmatpush2.bf16.msra.mxu0 %v3772_v44  ;;  %v4831_v44 = vrot.slane %v1429_v24, %v4387_v29 }
 0x16e   :  { %2161 = vmatprep.subr.bf16.mxu0 %v3780_v47 }
 0x16f   :  { %2207 = vmatpush2.bf16.msra.mxu1 %v3763_v37 }
 0x170   :  { %2208 = vmatprep.subr.bf16.mxu1 %v3771_v41 }
 0x171   :  { %2162 = vmatpush2.bf16.msra.mxu0 %v3778_v48 }
 0x172   :  { %2163 = vmatprep.subr.bf16.mxu0 %v3786_v15 }
 0x173   :  { %2209 = vmatpush2.bf16.msra.mxu1 %v3769_v42 }
 0x174   :  { %2210 = vmatprep.subr.bf16.mxu1 %v3777_v45 }
 0x175   :  { %2164 = vmatpush2.bf16.msra.mxu0 %v3784_v33 }
 0x176   :  { %2239 = vmatprep.subr.bf16.mxu0 %v3792_v35 }
 0x177   :  { %2211 = vmatpush2.bf16.msra.mxu1 %v3775_v46 }
 0x178   :  { %2212 = vmatprep.subr.bf16.mxu1 %v3783_v40 }
 0x17b   :  { %2213 = vmatpush2.bf16.msra.mxu1 %v3781_v34  ;;  %v4837_v34 = vrot.slane %v1457_v32, %v4387_v29 }
 0x17c   :  { %2214 = vmatprep.subr.bf16.mxu1 %v3789_v28 }
 0x17f   :  { %2215 = vmatpush2.bf16.msra.mxu1 %v3787_v18 }
 0x180   :  { %2216 = vmatprep.subr.bf16.mxu1 %v3795_v1 }
 0x183   :  { %2217 = vmatpush2.bf16.msra.mxu1 %v3793_v23 }
 0x1c6   :  { %v1196_v49 = vpop.f32.mrf.mxu1 }
 0x1c7   :  { %v1197_v21 = vadd.f32 %v1196_v49, %v4798_v8 }
 0x1c8   :  { %v1198_v50 = vpop.f32.mrf.mxu1 }
 0x1c9   :  { %v1199_v20 = vadd.f32 %v1198_v50, %v4801_v11 }
 0x1ca   :  { %v1200_v52 = vpop.f32.mrf.mxu1  ;;  %v1269_v59 = vpop.f32.mrf.mxu0 }
 0x1cb   :  { %v1201_v26 = vadd.f32 %v1200_v52, %v4798_v8  ;;  %v1270_v51 = vadd.f32 %v1269_v59, %v1197_v21 }
 0x1cc   :  { %v1202_v53 = vpop.f32.mrf.mxu1  ;;  %v1271_v61 = vpop.f32.mrf.mxu0 }
 0x1cd   :  { %v1272_v27 = vadd.f32 %v1271_v61, %v1199_v20  ;;  %v1203_v36 = vadd.f32 %v1202_v53, %v4801_v11 }
 0x1ce   :  { %v1273_v63 = vpop.f32.mrf.mxu0 }
 0x1cf   :  { %v1274_v37 = vadd.f32 %v1273_v63, %v1201_v26 }
 0x1d0   :  { %v1275_v2 = vpop.f32.mrf.mxu0 }
 0x1d1   :  { %v1276_v46 = vadd.f32 %v1275_v2, %v1203_v36 }
 0x1d6   :  { %v1206_v55 = vpop.f32.mrf.mxu1 }
 0x1d7   :  { %v1207_v41 = vadd.f32 %v1206_v55, %v4798_v8 }
 0x1d8   :  { %v1208_v56 = vpop.f32.mrf.mxu1 }
 0x1d9   :  { %v1209_v47 = vadd.f32 %v1208_v56, %v4801_v11 }
 0x1da   :  { %v1210_v57 = vpop.f32.mrf.mxu1  ;;  %v1279_v4 = vpop.f32.mrf.mxu0 }
 0x1db   :  { %v1211_v15 = vadd.f32 %v1210_v57, %v4798_v8  ;;  %v1280_v33 = vadd.f32 %v1279_v4, %v1207_v41 }
 0x1dc   :  { %v1212_v58 = vpop.f32.mrf.mxu1  ;;  %v1281_v9 = vpop.f32.mrf.mxu0 }
 0x1dd   :  { %v1213_v28 = vadd.f32 %v1212_v58, %v4801_v11  ;;  %v1282_v49 = vadd.f32 %v1281_v9, %v1209_v47 }
 0x1de   :  { %v1283_v14 = vpop.f32.mrf.mxu0 }
 0x1df   :  { %v1284_v50 = vadd.f32 %v1283_v14, %v1211_v15 }
 0x1e0   :  { %v1285_v17 = vpop.f32.mrf.mxu0 }
 0x1e1   :  { %v1286_v57 = vadd.f32 %v1285_v17, %v1213_v28 }
 0x1e6   :  { %v4782_v60 = vpop.f32.mrf.mxu1 }
 0x1e7   :  { %v1217_v58 = vadd.f32 %v4782_v60, %v4798_v8 }
 0x1e8   :  { %v4784_v62 = vpop.f32.mrf.mxu1 }
 0x1e9   :  { %v1219_v14 = vadd.f32 %v4784_v62, %v4801_v11 }
 0x1ea   :  { %v4786_v0 = vpop.f32.mrf.mxu1  ;;  %v4809_v19 = vpop.f32.mrf.mxu0 }
 0x1eb   :  { %v1290_v36 = vadd.f32 %v4809_v19, %v1217_v58  ;;  %v3790_v19 = vld [vmem:[%s5072_s7 + $0x270] ss:$8 sps:$4 sm:$0xff]  }
 0x1ec   :  { %v4788_v3 = vpop.f32.mrf.mxu1  ;;  %v4817_v31 = vpop.f32.mrf.mxu0 }
 0x1ee   :  { %v4834_v48 = vpop.f32.mrf.mxu0 }
 0x1f0   :  { %v1295_v55 = vpop.f32.mrf.mxu0 }
 0x1f6   :  { %v4793_v6 = vpop.f32.mrf.mxu1 }
 0x1f8   :  { %v4795_v7 = vpop.f32.mrf.mxu1 }
 0x1fa   :  { %v1230_v10 = vpop.f32.mrf.mxu1  ;;  %v1299_v5 = vpop.f32.mrf.mxu0 }
 0x1fb   :  { %v4804_v12 = vadd.f32 %v1230_v10, %v4798_v8 }
 0x1fc   :  { %v1232_v13 = vpop.f32.mrf.mxu1 }
 0x1fd   :  { %v4807_v16 = vadd.f32 %v1232_v13, %v4801_v11 }
 0x206   :  { %v1342_v22 = vpop.f32.mrf.mxu1 }
 0x207   :  { %v1343_v42 = vadd.f32 %v1342_v22, %v1270_v51 }
 0x208   :  { %v1344_v25 = vpop.f32.mrf.mxu1 }
 0x209   :  { %v1345_v39 = vadd.f32 %v1344_v25, %v1272_v27  ;;  %vm1381_vm2 = vcmp.ge.f32.partialorder %v1343_v42, 0.0  ;;  %v1397_v52 = vmul.f32 0.2, %v1343_v42  ;;  %v1221_v27 = vadd.f32 %v4786_v0, %v4798_v8 }
 0x20a   :  { %v1346_v45 = vpop.f32.mrf.mxu1  ;;  %v1292_v0 = vadd.f32 %v4817_v31, %v1219_v14 }
 0x20b   :  { %v1347_v40 = vadd.f32 %v1346_v45, %v1274_v37  ;;  %v1398_v18 = vmul.f32 0.2, %v1345_v39  ;;  %vm1382_vm0 = vcmp.ge.f32.partialorder %v1345_v39, 0.0  ;;  %v1413_v20 = vsel %vm1381_vm2, %v1343_v42, %v1397_v52  ;;  %v1301_v37 = vpop.f32.mrf.mxu0 }
 0x20c   :  { %v1348_v35 = vpop.f32.mrf.mxu1  ;;  %v1223_v45 = vadd.f32 %v4788_v3, %v4801_v11  ;;  %v3798_v3 = vld [vmem:[%s5072_s7 + $0x264] ss:$8 sps:$4 sm:$0xff]  }
 0x20d   :  { %vm1383_vm1 = vcmp.ge.f32.partialorder %v1347_v40, 0.0  ;;  %v1399_v1 = vmul.f32 0.2, %v1347_v40  ;;  %v1349_v23 = vadd.f32 %v1348_v35, %v1276_v46  ;;  %v1414_v63 = vsel %vm1382_vm0, %v1345_v39, %v1398_v18 }
 0x20e   :  { %v1352_v53 = vpop.f32.mrf.mxu1  ;;  %v1442_v32 = vmul.f32 %v4831_v44, %v1414_v63  ;;  %v1441_v39 = vmul.f32 %v4824_v38, %v1413_v20  ;;  %v3796_v63 = vld [vmem:[%s5072_s7 + $0x260] ss:$8 sps:$4 sm:$0xff]  }
 0x20f   :  { %v1415_v56 = vsel %vm1383_vm1, %v1347_v40, %v1399_v1  ;;  %vm1384_vm3 = vcmp.ge.f32.partialorder %v1349_v23, 0.0  ;;  %v1400_v59 = vmul.f32 0.2, %v1349_v23  ;;  %v1353_v61 = vadd.f32 %v1352_v53, %v1280_v33 }
 0x210   :  { %v1443_v2 = vmul.f32 %v4824_v38, %v1415_v56  ;;  %v1354_v4 = vpop.f32.mrf.mxu1  ;;  %v1470_v1 = vadd.f32 %v4837_v34, %v1442_v32  ;;  %v1469_v52 = vadd.f32 %v4828_v43, %v1441_v39  ;;  %v1296_v56 = vadd.f32 %v1295_v55, %v1223_v45  ;;  %v3801_v55 = vld [vmem:[%s5072_s7 + $0x254] ss:$8 sps:$4 sm:$0xff]  }
 0x211   :  { %v1416_v9 = vsel %vm1384_vm3, %v1349_v23, %v1400_v59  ;;  %vm1385_vm4 = vcmp.ge.f32.partialorder %v1353_v61, 0.0  ;;  %v1401_v10 = vmul.f32 0.2, %v1353_v61  ;;  %v1355_v13 = vadd.f32 %v1354_v4, %v1282_v49 }
 0x212   :  { %v4849_v17 = vadd.f32 %v4828_v43, %v1443_v2  ;;  %v1444_v60 = vmul.f32 %v4831_v44, %v1416_v9  ;;  %v1356_v21 = vpop.f32.mrf.mxu1  ;;  %v1294_v49 = vadd.f32 %v4834_v48, %v1221_v27  ;;  %v1227_v59 = vadd.f32 %v4793_v6, %v4798_v8 }
 0x213   :  { %v1417_v22 = vsel %vm1385_vm4, %v1353_v61, %v1401_v10  ;;  %vm1386_vm5 = vcmp.ge.f32.partialorder %v1355_v13, 0.0  ;;  %v1402_v24 = vmul.f32 0.2, %v1355_v13  ;;  %v1357_v26 = vadd.f32 %v1356_v21, %v1284_v50  ;;  %v1303_v50 = vpop.f32.mrf.mxu0 }
 0x214   :  { %v1445_v51 = vmul.f32 %v4824_v38, %v1417_v22  ;;  %v1358_v62 = vpop.f32.mrf.mxu1  ;;  %v4857_v25 = vadd.f32 %v4837_v34, %v1444_v60  ;;  %v1533_v15 = vpack.c.bf16 %v4849_v17, %v4015_v54  ;;  %v1229_v6 = vadd.f32 %v4795_v7, %v4801_v11  ;;  %v3799_v11 = vld [vmem:[%s5072_s7 + $0x250] ss:$8 sps:$4 sm:$0xff]  }
 0x215   :  { %v1418_v41 = vsel %vm1386_vm5, %v1355_v13, %v1402_v24  ;;  %v1359_v42 = vadd.f32 %v1358_v62, %v1286_v57  ;;  %v1403_v28 = vmul.f32 0.2, %v1357_v26  ;;  %vm1387_vm6 = vcmp.ge.f32.partialorder %v1357_v26, 0.0  ;;  %v1305_v14 = vpop.f32.mrf.mxu0 }
 0x216   :  { %v1446_v46 = vmul.f32 %v4831_v44, %v1418_v41  ;;  %v1362_v47 = vpop.f32.mrf.mxu1  ;;  %v1534_v40 = vpack.c.bf16 %v4857_v25, %v4015_v54  ;;  %v1473_v33 = vadd.f32 %v4828_v43, %v1445_v51  ;;  %v1300_v8 = vadd.f32 %v1299_v5, %v1227_v59  ;;  %v3804_v51 = vld [vmem:[%s5072_s7 + $0x244] ss:$8 sps:$4 sm:$0xff]   ;;  %v3805_v59 = vld [vmem:[%s5072_s7 + $0x230] ss:$8 sps:$4 sm:$0xff]  }
 0x217   :  { %v1363_v18 = vadd.f32 %v1362_v47, %v1290_v36  ;;  %v1404_v31 = vmul.f32 0.2, %v1359_v42  ;;  %vm1388_vm7 = vcmp.ge.f32.partialorder %v1359_v42, 0.0  ;;  %v1419_v48 = vsel %vm1387_vm6, %v1357_v26, %v1403_v28 }
 0x218   :  { %v1364_v35 = vpop.f32.mrf.mxu1  ;;  %2165 = vmatprep.mubr.bf16.mxu0 %v1534_v40  ;;  %v1474_v23 = vadd.f32 %v4837_v34, %v1446_v46  ;;  %v1535_v2 = vpack.c.bf16 %v1473_v33, %v1469_v52  ;;  %v1302_v21 = vadd.f32 %v1301_v37, %v1229_v6  ;;  %v1304_v22 = vadd.f32 %v1303_v50, %v4804_v12 }
 0x219   :  { %v1365_v53 = vadd.f32 %v1364_v35, %v1292_v0  ;;  %2166 = vmatmul.mubr.bf16.vlgmr.msra.gmra.mxu0 %v1533_v15  ;;  %v1405_v61 = vmul.f32 0.2, %v1363_v18  ;;  %vm1389_vm8 = vcmp.ge.f32.partialorder %v1363_v18, 0.0  ;;  %v1420_v9 = vsel %vm1388_vm7, %v1359_v42, %v1404_v31 }
 0x21a   :  { %2240 = vmatpush1.bf16.msra.mxu0 %v3790_v19  ;;  %v1366_v57 = vpop.f32.mrf.mxu1  ;;  %v1536_v58 = vpack.c.bf16 %v1474_v23, %v1470_v1  ;;  %v1447_v24 = vmul.f32 %v4824_v38, %v1419_v48  ;;  %v1306_v12 = vadd.f32 %v1305_v14, %v4807_v16  ;;  %v1448_v62 = vmul.f32 %v4831_v44, %v1420_v9  ;;  %v3802_v16 = vld [vmem:[%s5072_s7 + $0x240] ss:$8 sps:$4 sm:$0xff]  }
 0x21b   :  { %v1367_v4 = vadd.f32 %v1366_v57, %v1294_v49  ;;  %2241 = vmatprep.subr.bf16.mxu0 %v3798_v3  ;;  %v1406_v10 = vmul.f32 0.2, %v1365_v53  ;;  %vm1390_vm9 = vcmp.ge.f32.partialorder %v1365_v53, 0.0  ;;  %v1421_v26 = vsel %vm1389_vm8, %v1363_v18, %v1405_v61  ;;  %v3807_v18 = vld [vmem:[%s5072_s7 + $0x234] ss:$8 sps:$4 sm:$0xff]  }
 0x21c   :  { %v1368_v13 = vpop.f32.mrf.mxu1  ;;  %2218 = vmatprep.mubr.bf16.mxu1 %v1536_v58  ;;  %v1449_v0 = vmul.f32 %v4824_v38, %v1421_v26  ;;  %v4911_v40 = vadd.f32 %v4828_v43, %v1447_v24  ;;  %v1476_v1 = vadd.f32 %v4837_v34, %v1448_v62  ;;  %v3822_v24 = vld [vmem:[%s5072_s7 + $0x2e4] ss:$8 sps:$4 sm:$0xff]   ;;  %v3820_v26 = vld [vmem:[%s5072_s7 + $0x2e0] ss:$8 sps:$4 sm:$0xff]  }
 0x21d   :  { %vm1391_vm10 = vcmp.ge.f32.partialorder %v1367_v4, 0.0  ;;  %v1407_v20 = vmul.f32 0.2, %v1367_v4  ;;  %v1369_v60 = vadd.f32 %v1368_v13, %v1296_v56  ;;  %2219 = vmatmul.mubr.bf16.vlgmr.msra.gmra.mxu1 %v1535_v2  ;;  %v1422_v36 = vsel %vm1390_vm9, %v1365_v53, %v1406_v10  ;;  %v3832_v62 = vld [vmem:[%s5072_s7 + $0x2a0] ss:$8 sps:$4 sm:$0xff]  }
 0x21e   :  { %2242 = vmatpush1.bf16.msra.mxu0 %v3796_v63  ;;  %v1372_v7 = vpop.f32.mrf.mxu1  ;;  %v1450_v3 = vmul.f32 %v4831_v44, %v1422_v36  ;;  %v3810_v63 = vld [vmem:[%s5072_s7 + $0x224] ss:$8 sps:$4 sm:$0xff]   ;;  %v1477_v9 = vadd.f32 %v4828_v43, %v1449_v0  ;;  %v3837_v36 = vld [vmem:[%s5072_s7 + $0x294] ss:$8 sps:$4 sm:$0xff]  }
 0x21f   :  { %v1423_v5 = vsel %vm1391_vm10, %v1367_v4, %v1407_v20  ;;  %vm1392_vm11 = vcmp.ge.f32.partialorder %v1369_v60, 0.0  ;;  %v1408_v27 = vmul.f32 0.2, %v1369_v60  ;;  %v1373_v32 = vadd.f32 %v1372_v7, %v1300_v8  ;;  %2243 = vmatprep.subr.bf16.mxu0 %v3801_v55  ;;  %v3813_v20 = vld [vmem:[%s5072_s7 + $0x214] ss:$8 sps:$4 sm:$0xff]  }
 0x220   :  { %v1451_v37 = vmul.f32 %v4824_v38, %v1423_v5  ;;  %v1374_v39 = vpop.f32.mrf.mxu1  ;;  %v1538_v4 = vpack.c.bf16 %v1476_v1, %v4857_v25  ;;  %v1478_v55 = vadd.f32 %v4837_v34, %v1450_v3  ;;  %v3825_v7 = vld [vmem:[%s5072_s7 + $0x2d4] ss:$8 sps:$4 sm:$0xff]   ;;  %v3828_v5 = vld [vmem:[%s5072_s7 + $0x2c4] ss:$8 sps:$4 sm:$0xff]  }
 0x221   :  { %v1424_v41 = vsel %vm1392_vm11, %v1369_v60, %v1408_v27  ;;  %vm1393_vm12 = vcmp.ge.f32.partialorder %v1373_v32, 0.0  ;;  %v1409_v42 = vmul.f32 0.2, %v1373_v32  ;;  %v1375_v45 = vadd.f32 %v1374_v39, %v1302_v21  ;;  %v3814_v21 = vld [vmem:[%s5072_s7 + $0x200] ss:$8 sps:$4 sm:$0xff]  }
 0x222   :  { %v1452_v46 = vmul.f32 %v4831_v44, %v1424_v41  ;;  %2244 = vmatpush1.bf16.msra.mxu0 %v3799_v11  ;;  %v1376_v47 = vpop.f32.mrf.mxu1  ;;  %v4914_v19 = vadd.f32 %v4828_v43, %v1451_v37  ;;  %v3823_v11 = vld [vmem:[%s5072_s7 + $0x2d0] ss:$8 sps:$4 sm:$0xff]   ;;  %v3826_v27 = vld [vmem:[%s5072_s7 + $0x2c0] ss:$8 sps:$4 sm:$0xff]   ;;  %v3840_v39 = vld [vmem:[%s5072_s7 + $0x284] ss:$8 sps:$4 sm:$0xff]  }
 0x223   :  { %v1425_v15 = vsel %vm1393_vm12, %v1373_v32, %v1409_v42  ;;  %vm1394_vm13 = vcmp.ge.f32.partialorder %v1375_v45, 0.0  ;;  %v1410_v33 = vmul.f32 0.2, %v1375_v45  ;;  %v1377_v28 = vadd.f32 %v1376_v47, %v1304_v22  ;;  %2245 = vmatprep.subr.bf16.mxu0 %v3804_v51  ;;  %v3817_v22 = vld [vmem:[%s5072_s7 + $0x2f0] ss:$8 sps:$4 sm:$0xff]  }
 0x224   :  { %v1453_v31 = vmul.f32 %v4824_v38, %v1425_v15  ;;  %v1378_v35 = vpop.f32.mrf.mxu1  ;;  %v4923_v23 = vadd.f32 %v4837_v34, %v1452_v46  ;;  %v1539_v61 = vpack.c.bf16 %v4914_v19, %v4911_v40  ;;  %v3831_v32 = vld [vmem:[%s5072_s7 + $0x2b4] ss:$8 sps:$4 sm:$0xff]   ;;  %v3829_v51 = vld [vmem:[%s5072_s7 + $0x2b0] ss:$8 sps:$4 sm:$0xff]   ;;  %v3838_v41 = vld [vmem:[%s5072_s7 + $0x280] ss:$8 sps:$4 sm:$0xff]   ;;  %v1537_v42 = vpack.c.bf16 %v4911_v40, %v4849_v17 }
 0x225   :  { %v1426_v49 = vsel %vm1394_vm13, %v1375_v45, %v1410_v33  ;;  %vm1395_vm14 = vcmp.ge.f32.partialorder %v1377_v28, 0.0  ;;  %v1411_v50 = vmul.f32 0.2, %v1377_v28  ;;  %v1379_v52 = vadd.f32 %v1378_v35, %v1306_v12  ;;  %v3834_v12 = vld [vmem:[%s5072_s7 + $0x2a4] ss:$8 sps:$4 sm:$0xff]  }
 0x226   :  { %v1454_v53 = vmul.f32 %v4831_v44, %v1426_v49  ;;  %2246 = vmatpush1.bf16.msra.mxu0 %v3802_v16  ;;  %v1540_v56 = vpack.c.bf16 %v4923_v23, %v1476_v1  ;;  %v1481_v2 = vadd.f32 %v4828_v43, %v1453_v31  ;;  %v3835_v37 = vld [vmem:[%s5072_s7 + $0x290] ss:$8 sps:$4 sm:$0xff]   ;;  %v3844_v15 = vld [vmem:[#allocation6 + $0x60] ss:$8 sps:$4 sm:$0xff]   ;;  %vm3195_vm12 = vcmask 7168  }
 0x227   :  { %v1427_v57 = vsel %vm1395_vm14, %v1377_v28, %v1411_v50  ;;  %vm1396_vm15 = vcmp.ge.f32.partialorder %v1379_v52, 0.0  ;;  %v1412_v58 = vmul.f32 0.2, %v1379_v52  ;;  %2247 = vmatprep.subr.bf16.mxu0 %v3807_v18  ;;  %v3843_v46 = vld [vmem:[#allocation6 + $0x74] ss:$8 sps:$4 sm:$0xff]  }
 0x228   :  { %v1455_v48 = vmul.f32 %v4824_v38, %v1427_v57  ;;  %2175 = vmatprep.mubr.bf16.mxu0 %v1540_v56  ;;  %v1482_v6 = vadd.f32 %v4837_v34, %v1454_v53  ;;  %v3808_v38 = vld [vmem:[%s5072_s7 + $0x220] ss:$8 sps:$4 sm:$0xff]   ;;  %v1541_v25 = vpack.c.bf16 %v1481_v2, %v1477_v9  ;;  %v3841_v47 = vld [vmem:[#allocation6 + $0x70] ss:$8 sps:$4 sm:$0xff]   ;;  %2974 = vmatprep.subr.bf16.mxu1 %v3843_v46 }
 0x229   :  { %v1428_v8 = vsel %vm1396_vm15, %v1379_v52, %v1412_v58  ;;  %2176 = vmatmul.mubr.bf16.gmra.mxu0 %v1539_v61  ;;  %2975 = vmatpush1.bf16.msra.mxu1 %v3841_v47  ;;  %v3846_v16 = vld [vmem:[#allocation6 + $0x64] ss:$8 sps:$4 sm:$0xff]   ;;  %v3849_v33 = vld [vmem:[#allocation6 + $0x174] ss:$8 sps:$4 sm:$0xff]   ;;  %v3847_v28 = vld [vmem:[#allocation6 + $0x170] ss:$8 sps:$4 sm:$0xff]  }
 0x22a   :  { %v1456_v10 = vmul.f32 %v4831_v44, %v1428_v8  ;;  %2248 = vmatpush1.bf16.msra.mxu0 %v3805_v59  ;;  %2271 = vmatprep.mubr.bf16.mxu0 %v1538_v4  ;;  %v1542_v13 = vpack.c.bf16 %v1482_v6, %v1478_v55  ;;  %v1483_v14 = vadd.f32 %v4828_v43, %v1455_v48  ;;  %v3811_v44 = vld [vmem:[%s5072_s7 + $0x210] ss:$8 sps:$4 sm:$0xff]   ;;  %v3816_v43 = vld [vmem:[%s5072_s7 + $0x204] ss:$8 sps:$4 sm:$0xff]  }
 0x22b   :  { %2249 = vmatprep.subr.bf16.mxu0 %v3810_v63  ;;  %2976 = vmatprep.subr.bf16.mxu1 %v3846_v16  ;;  %v3852_v17 = vld [vmem:[#allocation6 + $0x54] ss:$8 sps:$4 sm:$0xff]   ;;  %v3850_v40 = vld [vmem:[#allocation6 + $0x50] ss:$8 sps:$4 sm:$0xff]   ;;  %v3855_v18 = vld [vmem:[#allocation6 + $0x164] ss:$8 sps:$4 sm:$0xff]  }
 0x22c   :  { %2228 = vmatprep.mubr.bf16.mxu1 %v1542_v13  ;;  %v1484_v60 = vadd.f32 %v4837_v34, %v1456_v10  ;;  %v3819_v34 = vld [vmem:[%s5072_s7 + $0x2f4] ss:$8 sps:$4 sm:$0xff]   ;;  %v1543_v0 = vpack.c.bf16 %v1483_v14, %v4914_v19  ;;  %v3853_v3 = vld [vmem:[#allocation6 + $0x160] ss:$8 sps:$4 sm:$0xff]   ;;  %v3858_v31 = vld [vmem:[#allocation6 + $0x44] ss:$8 sps:$4 sm:$0xff]  }
 0x22d   :  { %2229 = vmatmul.mubr.bf16.gmra.mxu1 %v1541_v25  ;;  %v3856_v19 = vld [vmem:[#allocation6 + $0x40] ss:$8 sps:$4 sm:$0xff]   ;;  %v3859_v35 = vld [vmem:[#allocation6 + $0x150] ss:$8 sps:$4 sm:$0xff]   ;;  %v3861_v1 = vld [vmem:[#allocation6 + $0x154] ss:$8 sps:$4 sm:$0xff]  }
 0x22e   :  { %2250 = vmatpush1.bf16.msra.mxu0 %v3808_v38  ;;  %v1544_v45 = vpack.c.bf16 %v1484_v60, %v4923_v23  ;;  %2977 = vmatpush1.bf16.msra.mxu1 %v3844_v15  ;;  %v3864_v23 = vld [vmem:[#allocation6 + $0x34] ss:$8 sps:$4 sm:$0xff]   ;;  %v3867_v49 = vld [vmem:[#allocation6 + $0x144] ss:$8 sps:$4 sm:$0xff]   ;;  %v3862_v50 = vld [vmem:[#allocation6 + $0x30] ss:$8 sps:$4 sm:$0xff]  }
 0x22f   :  { %2251 = vmatprep.subr.bf16.mxu0 %v3813_v20  ;;  %2978 = vmatprep.subr.bf16.mxu1 %v3852_v17  ;;  %v3865_v52 = vld [vmem:[#allocation6 + $0x140] ss:$8 sps:$4 sm:$0xff]   ;;  %v3870_v53 = vld [vmem:[#allocation6 + $0x24] ss:$8 sps:$4 sm:$0xff]   ;;  %v3873_v56 = vld [vmem:[#allocation6 + $0x134] ss:$8 sps:$4 sm:$0xff]  }
 0x230   :  { %v3868_v59 = vld [vmem:[#allocation6 + $0x20] ss:$8 sps:$4 sm:$0xff]   ;;  %v3871_v61 = vld [vmem:[#allocation6 + $0x130] ss:$8 sps:$4 sm:$0xff]   ;;  %v3876_v57 = vld [vmem:[#allocation6 + $0x14] ss:$8 sps:$4 sm:$0xff]  }
 0x231   :  { %v3879_v58 = vld [vmem:[#allocation6 + $0x124] ss:$8 sps:$4 sm:$0xff]   ;;  %v3874_v63 = vld [vmem:[#allocation6 + $0x10] ss:$8 sps:$4 sm:$0xff]   ;;  %v3877_v2 = vld [vmem:[#allocation6 + $0x120] ss:$8 sps:$4 sm:$0xff]  }
 0x232   :  { %2252 = vmatpush1.bf16.msra.mxu0 %v3811_v44  ;;  %2979 = vmatpush1.bf16.msra.mxu1 %v3850_v40  ;;  %v3882_v48 = vld [vmem:[#allocation6 + $0x4] ss:$8 sps:$4 sm:$0xff]   ;;  %v3885_v4 = vld [vmem:[#allocation6 + $0x114] ss:$8 sps:$4 sm:$0xff]   ;;  %v3880_v55 = vld [vmem:[#allocation6] ss:$8 sps:$4 sm:$0xff]  }
 0x233   :  { %2253 = vmatprep.subr.bf16.mxu0 %v3816_v43  ;;  %2980 = vmatprep.subr.bf16.mxu1 %v3858_v31  ;;  %v3883_v6 = vld [vmem:[#allocation6 + $0x110] ss:$8 sps:$4 sm:$0xff]   ;;  %v3888_v8 = vld [vmem:[#allocation6 + $0xf4] ss:$8 sps:$4 sm:$0xff]   ;;  %v3891_v9 = vld [vmem:[#allocation6 + $0x104] ss:$8 sps:$4 sm:$0xff]  }
 0x234   :  { %v3886_v10 = vld [vmem:[#allocation6 + $0xf0] ss:$8 sps:$4 sm:$0xff]   ;;  %v3889_v13 = vld [vmem:[#allocation6 + $0x100] ss:$8 sps:$4 sm:$0xff]   ;;  %v3894_v38 = vld [vmem:[#allocation6 + $0xe4] ss:$8 sps:$4 sm:$0xff]  }
 0x235   :  { %v3897_v14 = vld [vmem:[#allocation6 + $0x1f4] ss:$8 sps:$4 sm:$0xff]   ;;  %v3892_v25 = vld [vmem:[#allocation6 + $0xe0] ss:$8 sps:$4 sm:$0xff]   ;;  %v3895_v20 = vld [vmem:[#allocation6 + $0x1f0] ss:$8 sps:$4 sm:$0xff]  }
 0x236   :  { %2254 = vmatpush1.bf16.msra.mxu0 %v3814_v21  ;;  %2981 = vmatpush1.bf16.msra.mxu1 %v3856_v19  ;;  %v3900_v60 = vld [vmem:[#allocation6 + $0xd4] ss:$8 sps:$4 sm:$0xff]   ;;  %v3903_v44 = vld [vmem:[#allocation6 + $0x1e4] ss:$8 sps:$4 sm:$0xff]   ;;  %v3898_v43 = vld [vmem:[#allocation6 + $0xd0] ss:$8 sps:$4 sm:$0xff]  }
 0x237   :  { %2255 = vmatprep.subr.bf16.mxu0 %v3819_v34  ;;  %2982 = vmatprep.subr.bf16.mxu1 %v3864_v23  ;;  %v3901_v21 = vld [vmem:[#allocation6 + $0x1e0] ss:$8 sps:$4 sm:$0xff]   ;;  %v3906_v34 = vld [vmem:[#allocation6 + $0xc4] ss:$8 sps:$4 sm:$0xff]   ;;  %v3931_v46 = vld [vmem:[#allocation6 + $0x190] ss:$8 sps:$4 sm:$0xff]  }
 0x238   :  { %v3936_v47 = vld [vmem:[#allocation6 + $0x274] ss:$8 sps:$4 sm:$0xff]   ;;  %v3939_v16 = vld [vmem:[#allocation6 + $0x184] ss:$8 sps:$4 sm:$0xff]   ;;  %v3937_v15 = vld [vmem:[#allocation6 + $0x180] ss:$8 sps:$4 sm:$0xff]  }
 0x23a   :  { %2256 = vmatpush2.bf16.msra.mxu0 %v3817_v22  ;;  %2983 = vmatpush1.bf16.msra.mxu1 %v3862_v50  ;;  %v3909_v22 = vld [vmem:[#allocation6 + $0x1d4] ss:$8 sps:$4 sm:$0xff]  }
 0x23b   :  { %2257 = vmatprep.subr.bf16.mxu0 %v3822_v24  ;;  %2984 = vmatprep.subr.bf16.mxu1 %v3870_v53  ;;  %v3904_v24 = vld [vmem:[#allocation6 + $0xc0] ss:$8 sps:$4 sm:$0xff]  }
 0x23e   :  { %2258 = vmatpush2.bf16.msra.mxu0 %v3820_v26  ;;  %2985 = vmatpush1.bf16.msra.mxu1 %v3868_v59  ;;  %v3907_v26 = vld [vmem:[#allocation6 + $0x1d0] ss:$8 sps:$4 sm:$0xff]  }
 0x23f   :  { %2259 = vmatprep.subr.bf16.mxu0 %v3825_v7  ;;  %2986 = vmatprep.subr.bf16.mxu1 %v3876_v57  ;;  %v3912_v7 = vld [vmem:[#allocation6 + $0xb4] ss:$8 sps:$4 sm:$0xff]  }
 0x242   :  { %2260 = vmatpush2.bf16.msra.mxu0 %v3823_v11  ;;  %2987 = vmatpush1.bf16.msra.mxu1 %v3874_v63  ;;  %v3910_v11 = vld [vmem:[#allocation6 + $0xb0] ss:$8 sps:$4 sm:$0xff]  }
 0x243   :  { %2261 = vmatprep.subr.bf16.mxu0 %v3828_v5  ;;  %2988 = vmatprep.subr.bf16.mxu1 %v3882_v48  ;;  %v3915_v5 = vld [vmem:[#allocation6 + $0x1c4] ss:$8 sps:$4 sm:$0xff]  }
 0x246   :  { %2262 = vmatpush2.bf16.msra.mxu0 %v3826_v27  ;;  %2989 = vmatpush1.bf16.msra.mxu1 %v3880_v55  ;;  %v3913_v27 = vld [vmem:[#allocation6 + $0x1c0] ss:$8 sps:$4 sm:$0xff]  }
 0x247   :  { %2263 = vmatprep.subr.bf16.mxu0 %v3831_v32  ;;  %2990 = vmatprep.subr.bf16.mxu1 %v3888_v8  ;;  %v3918_v32 = vld [vmem:[#allocation6 + $0xa4] ss:$8 sps:$4 sm:$0xff]  }
 0x24a   :  { %2264 = vmatpush2.bf16.msra.mxu0 %v3829_v51  ;;  %2991 = vmatpush2.bf16.msra.mxu1 %v3886_v10  ;;  %v3916_v51 = vld [vmem:[#allocation6 + $0xa0] ss:$8 sps:$4 sm:$0xff]  }
 0x24b   :  { %2265 = vmatprep.subr.bf16.mxu0 %v3834_v12  ;;  %2992 = vmatprep.subr.bf16.mxu1 %v3894_v38  ;;  %v3921_v12 = vld [vmem:[#allocation6 + $0x1b4] ss:$8 sps:$4 sm:$0xff]  }
 0x24e   :  { %2266 = vmatpush2.bf16.msra.mxu0 %v3832_v62  ;;  %2993 = vmatpush2.bf16.msra.mxu1 %v3892_v25  ;;  %v3919_v62 = vld [vmem:[#allocation6 + $0x1b0] ss:$8 sps:$4 sm:$0xff]  }
 0x24f   :  { %2267 = vmatprep.subr.bf16.mxu0 %v3837_v36  ;;  %2994 = vmatprep.subr.bf16.mxu1 %v3900_v60  ;;  %v3924_v36 = vld [vmem:[#allocation6 + $0x94] ss:$8 sps:$4 sm:$0xff]  }
 0x252   :  { %2268 = vmatpush2.bf16.msra.mxu0 %v3835_v37  ;;  %2995 = vmatpush2.bf16.msra.mxu1 %v3898_v43  ;;  %v3922_v37 = vld [vmem:[#allocation6 + $0x90] ss:$8 sps:$4 sm:$0xff]   ;;  %v2336_v43 = vld [vmem:[%s5075_s10] sm:$0x3] }
 0x253   :  { %2269 = vmatprep.subr.bf16.mxu0 %v3840_v39  ;;  %2996 = vmatprep.subr.bf16.mxu1 %v3906_v34  ;;  %v3927_v39 = vld [vmem:[#allocation6 + $0x1a4] ss:$8 sps:$4 sm:$0xff]  }
 0x256   :  { %2270 = vmatpush2.bf16.msra.mxu0 %v3838_v41  ;;  %2997 = vmatpush2.bf16.msra.mxu1 %v3904_v24  ;;  %v3925_v41 = vld [vmem:[#allocation6 + $0x1a0] ss:$8 sps:$4 sm:$0xff]  }
 0x257   :  { %3017 = vmatprep.subr.bf16.mxu0 %v3849_v33  ;;  %2998 = vmatprep.subr.bf16.mxu1 %v3912_v7 }
 0x259   :  { %2272 = vmatmul.mubr.bf16.vlgmr.msra.gmra.mxu0 %v1537_v42  ;;  %v3930_v42 = vld [vmem:[#allocation6 + $0x84] ss:$8 sps:$4 sm:$0xff]  }
 0x25a   :  { %2281 = vmatprep.mubr.bf16.mxu0 %v1544_v45  ;;  %3018 = vmatpush1.bf16.msra.mxu0 %v3847_v28  ;;  %v3928_v45 = vld [vmem:[#allocation6 + $0x80] ss:$8 sps:$4 sm:$0xff]  }
 0x25b   :  { %3019 = vmatprep.subr.bf16.mxu0 %v3855_v18  ;;  %2999 = vmatpush2.bf16.msra.mxu1 %v3910_v11  ;;  %v1641_v18 = vld [vmem:[%s5073_s8] sm:$0x3] }
 0x25c   :  { %3000 = vmatprep.subr.bf16.mxu1 %v3918_v32  ;;  %v1646_v31 = vrot.slane %v1641_v18, %v4389_v30  ;;  %v2341_v32 = vrot.slane %v2336_v43, %v4389_v30 }
 0x25e   :  { %3020 = vmatpush1.bf16.msra.mxu0 %v3853_v3 }
 0x25f   :  { %3021 = vmatprep.subr.bf16.mxu0 %v3861_v1  ;;  %3001 = vmatpush2.bf16.msra.mxu1 %v3916_v51 }
 0x260   :  { %3002 = vmatprep.subr.bf16.mxu1 %v3924_v36 }
 0x261   :  { %2282 = vmatmul.mubr.bf16.gmra.mxu0 %v1543_v0  ;;  %v3933_v0 = vld [vmem:[#allocation6 + $0x194] ss:$8 sps:$4 sm:$0xff]  }
 0x262   :  { %3022 = vmatpush1.bf16.msra.mxu0 %v3859_v35 }
 0x263   :  { %3023 = vmatprep.subr.bf16.mxu0 %v3867_v49  ;;  %3003 = vmatpush2.bf16.msra.mxu1 %v3922_v37 }
 0x264   :  { %3004 = vmatprep.subr.bf16.mxu1 %v3930_v42 }
 0x266   :  { %3024 = vmatpush1.bf16.msra.mxu0 %v3865_v52  ;;  %v1650_v52 = vrot.slane %v1641_v18, %v4387_v29  ;;  %v2345_v18 = vrot.slane %v2336_v43, %v4387_v29  ;;  %v3943_v43 = vld [vmem:[#allocation6 + $0x250] ss:$8 sps:$4 sm:$0xff]  }
 0x267   :  { %3025 = vmatprep.subr.bf16.mxu0 %v3873_v56  ;;  %3005 = vmatpush2.bf16.msra.mxu1 %v3928_v45 }
 0x268   :  { %3060 = vmatprep.subr.bf16.mxu1 %v3936_v47 }
 0x26a   :  { %3026 = vmatpush1.bf16.msra.mxu0 %v3871_v61 }
 0x26b   :  { %3027 = vmatprep.subr.bf16.mxu0 %v3879_v58 }
 0x26e   :  { %3028 = vmatpush1.bf16.msra.mxu0 %v3877_v2 }
 0x26f   :  { %3029 = vmatprep.subr.bf16.mxu0 %v3885_v4 }
 0x272   :  { %3030 = vmatpush1.bf16.msra.mxu0 %v3883_v6  ;;  %v2316_v6 = vld [vmem:[%s5074_s9] sm:$0x3] }
 0x273   :  { %3031 = vmatprep.subr.bf16.mxu0 %v3891_v9  ;;  %v2325_v51 = vrot.slane %v2316_v6, %v4387_v29 }
 0x276   :  { %3032 = vmatpush1.bf16.msra.mxu0 %v3889_v13 }
 0x277   :  { %3033 = vmatprep.subr.bf16.mxu0 %v3897_v14 }
 0x27a   :  { %3034 = vmatpush2.bf16.msra.mxu0 %v3895_v20 }
 0x27b   :  { %3035 = vmatprep.subr.bf16.mxu0 %v3903_v44  ;;  %v2321_v44 = vrot.slane %v2316_v6, %v4389_v30 }
 0x27e   :  { %3036 = vmatpush2.bf16.msra.mxu0 %v3901_v21 }
 0x27f   :  { %3037 = vmatprep.subr.bf16.mxu0 %v3909_v22 }
 0x282   :  { %3038 = vmatpush2.bf16.msra.mxu0 %v3907_v26 }
 0x283   :  { %3039 = vmatprep.subr.bf16.mxu0 %v3915_v5 }
 0x286   :  { %3040 = vmatpush2.bf16.msra.mxu0 %v3913_v27 }
 0x287   :  { %3041 = vmatprep.subr.bf16.mxu0 %v3921_v12 }
 0x28a   :  { %3042 = vmatpush2.bf16.msra.mxu0 %v3919_v62 }
 0x28b   :  { %3043 = vmatprep.subr.bf16.mxu0 %v3927_v39 }
 0x28e   :  { %3044 = vmatpush2.bf16.msra.mxu0 %v3925_v41 }
 0x28f   :  { %3045 = vmatprep.subr.bf16.mxu0 %v3933_v0 }
 0x292   :  { %3046 = vmatpush2.bf16.msra.mxu0 %v3931_v46 }
 0x293   :  { %3047 = vmatprep.subr.bf16.mxu0 %v3939_v16 }
 0x296   :  { %3048 = vmatpush2.bf16.msra.mxu0 %v3937_v15 }
 0x2d9   :  { %v2167_v33 = vpop.f32.mrf.mxu0 }
 0x2da   :  { %v2168_v59 = vadd.f32 %v2167_v33, %v1646_v31 }
 0x2db   :  { %v2169_v28 = vpop.f32.mrf.mxu0 }
 0x2dc   :  { %v2170_v57 = vadd.f32 %v2169_v28, %v1650_v52 }
 0x2dd   :  { %v2171_v17 = vpop.f32.mrf.mxu0  ;;  %v2220_v23 = vpop.f32.mrf.mxu1 }
 0x2de   :  { %v2221_v58 = vadd.f32 %v2220_v23, %v2168_v59  ;;  %v2172_v2 = vadd.f32 %v2171_v17, %v1646_v31 }
 0x2df   :  { %v2173_v40 = vpop.f32.mrf.mxu0  ;;  %v2222_v49 = vpop.f32.mrf.mxu1 }
 0x2e0   :  { %v2223_v48 = vadd.f32 %v2222_v49, %v2170_v57  ;;  %v2174_v9 = vadd.f32 %v2173_v40, %v1650_v52 }
 0x2e1   :  { %v2224_v50 = vpop.f32.mrf.mxu1 }
 0x2e2   :  { %v2225_v10 = vadd.f32 %v2224_v50, %v2172_v2 }
 0x2e3   :  { %v2226_v53 = vpop.f32.mrf.mxu1 }
 0x2e4   :  { %v2227_v25 = vadd.f32 %v2226_v53, %v2174_v9 }
 0x2e9   :  { %v2177_v3 = vpop.f32.mrf.mxu0 }
 0x2ea   :  { %v2178_v38 = vadd.f32 %v2177_v3, %v1646_v31 }
 0x2eb   :  { %v2179_v19 = vpop.f32.mrf.mxu0 }
 0x2ec   :  { %v2180_v20 = vadd.f32 %v2179_v19, %v1650_v52 }
 0x2ed   :  { %v2181_v35 = vpop.f32.mrf.mxu0  ;;  %v2230_v56 = vpop.f32.mrf.mxu1 }
 0x2ee   :  { %v2182_v1 = vadd.f32 %v2181_v35, %v1646_v31  ;;  %v2231_v34 = vadd.f32 %v2230_v56, %v2178_v38 }
 0x2ef   :  { %v2183_v61 = vpop.f32.mrf.mxu0  ;;  %v2232_v4 = vpop.f32.mrf.mxu1 }
 0x2f0   :  { %v2184_v5 = vadd.f32 %v2183_v61, %v1650_v52  ;;  %v2233_v27 = vadd.f32 %v2232_v4, %v2180_v20  ;;  %v3942_v4 = vld [vmem:[#allocation6 + $0x264] ss:$8 sps:$4 sm:$0xff]   ;;  %v3945_v20 = vld [vmem:[#allocation6 + $0x254] ss:$8 sps:$4 sm:$0xff]  }
 0x2f1   :  { %v2234_v60 = vpop.f32.mrf.mxu1 }
 0x2f2   :  { %v2235_v41 = vadd.f32 %v2234_v60, %v2182_v1 }
 0x2f3   :  { %v2236_v62 = vpop.f32.mrf.mxu1 }
 0x2f4   :  { %v2237_v33 = vadd.f32 %v2236_v62, %v2184_v5  ;;  %v3957_v5 = vld [vmem:[#allocation6 + $0x214] ss:$8 sps:$4 sm:$0xff]   ;;  %v3961_v62 = vld [vmem:[#allocation6 + $0x2f0] ss:$8 sps:$4 sm:$0xff]  }
 0x319   :  { %v2273_v63 = vpop.f32.mrf.mxu0 }
 0x31a   :  { %v2274_v55 = vadd.f32 %v2273_v63, %v2221_v58  ;;  %v3934_v58 = vld [vmem:[#allocation6 + $0x270] ss:$8 sps:$4 sm:$0xff]  }
 0x31b   :  { %v2275_v8 = vpop.f32.mrf.mxu0 }
 0x31c   :  { %v2276_v13 = vadd.f32 %v2275_v8, %v2223_v48  ;;  %vm2292_vm0 = vcmp.ge.f32.partialorder %v2274_v55, 0.0  ;;  %v2300_v22 = vmul.f32 0.2, %v2274_v55 }
 0x31d   :  { %v2277_v14 = vpop.f32.mrf.mxu0 }
 0x31e   :  { %v2278_v21 = vadd.f32 %v2277_v14, %v2225_v10  ;;  %v2301_v24 = vmul.f32 0.2, %v2276_v13  ;;  %vm2293_vm1 = vcmp.ge.f32.partialorder %v2276_v13, 0.0  ;;  %v2308_v42 = vsel %vm2292_vm0, %v2274_v55, %v2300_v22  ;;  %v3946_v22 = vld [vmem:[#allocation6 + $0x240] ss:$8 sps:$4 sm:$0xff]  }
 0x31f   :  { %v2279_v26 = vpop.f32.mrf.mxu0  ;;  %v2328_v35 = vmul.f32 %v2321_v44, %v2308_v42  ;;  %v3972_v42 = vld [vmem:[#allocation6 + $0x2c4] ss:$8 sps:$4 sm:$0xff]  }
 0x320   :  { %vm2294_vm2 = vcmp.ge.f32.partialorder %v2278_v21, 0.0  ;;  %v2302_v7 = vmul.f32 0.2, %v2278_v21  ;;  %v2280_v11 = vadd.f32 %v2279_v26, %v2227_v25  ;;  %v2309_v45 = vsel %vm2293_vm1, %v2276_v13, %v2301_v24  ;;  %v3940_v25 = vld [vmem:[#allocation6 + $0x260] ss:$8 sps:$4 sm:$0xff]  }
 0x321   :  { %v2283_v12 = vpop.f32.mrf.mxu0  ;;  %v2329_v1 = vmul.f32 %v2325_v51, %v2309_v45  ;;  %v2348_v9 = vadd.f32 %v2341_v32, %v2328_v35  ;;  %v3951_v24 = vld [vmem:[#allocation6 + $0x234] ss:$8 sps:$4 sm:$0xff]   ;;  %v3949_v26 = vld [vmem:[#allocation6 + $0x230] ss:$8 sps:$4 sm:$0xff]   ;;  %v3970_v45 = vld [vmem:[#allocation6 + $0x2c0] ss:$8 sps:$4 sm:$0xff]  }
 0x322   :  { %v2310_v36 = vsel %vm2294_vm2, %v2278_v21, %v2302_v7  ;;  %vm2295_vm3 = vcmp.ge.f32.partialorder %v2280_v11, 0.0  ;;  %v2303_v37 = vmul.f32 0.2, %v2280_v11  ;;  %v2284_v39 = vadd.f32 %v2283_v12, %v2231_v34  ;;  %v3948_v34 = vld [vmem:[#allocation6 + $0x244] ss:$8 sps:$4 sm:$0xff]  }
 0x323   :  { %v2330_v0 = vmul.f32 %v2321_v44, %v2310_v36  ;;  %v2285_v46 = vpop.f32.mrf.mxu0  ;;  %v2349_v6 = vadd.f32 %v2345_v18, %v2329_v1  ;;  %v3954_v7 = vld [vmem:[#allocation6 + $0x224] ss:$8 sps:$4 sm:$0xff]   ;;  %v3963_v12 = vld [vmem:[#allocation6 + $0x2f4] ss:$8 sps:$4 sm:$0xff]  }
 0x324   :  { %v2311_v47 = vsel %vm2295_vm3, %v2280_v11, %v2303_v37  ;;  %vm2296_vm4 = vcmp.ge.f32.partialorder %v2284_v39, 0.0  ;;  %v2304_v16 = vmul.f32 0.2, %v2284_v39  ;;  %v2286_v15 = vadd.f32 %v2285_v46, %v2233_v27  ;;  %v3952_v11 = vld [vmem:[#allocation6 + $0x220] ss:$8 sps:$4 sm:$0xff]  }
 0x325   :  { %v5027_v28 = vadd.f32 %v2341_v32, %v2330_v0  ;;  %v2331_v17 = vmul.f32 %v2325_v51, %v2311_v47  ;;  %v2287_v40 = vpop.f32.mrf.mxu0  ;;  %v3955_v27 = vld [vmem:[#allocation6 + $0x210] ss:$8 sps:$4 sm:$0xff]   ;;  %v3966_v36 = vld [vmem:[#allocation6 + $0x2e4] ss:$8 sps:$4 sm:$0xff]   ;;  %v3964_v37 = vld [vmem:[#allocation6 + $0x2e0] ss:$8 sps:$4 sm:$0xff]  }
 0x326   :  { %v2312_v3 = vsel %vm2296_vm4, %v2284_v39, %v2304_v16  ;;  %vm2297_vm5 = vcmp.ge.f32.partialorder %v2286_v15, 0.0  ;;  %v2305_v19 = vmul.f32 0.2, %v2286_v15  ;;  %v2288_v31 = vadd.f32 %v2287_v40, %v2235_v41  ;;  %v3969_v39 = vld [vmem:[#allocation6 + $0x2d4] ss:$8 sps:$4 sm:$0xff]  }
 0x327   :  { %v2332_v23 = vmul.f32 %v2321_v44, %v2312_v3  ;;  %v2289_v49 = vpop.f32.mrf.mxu0  ;;  %v2351_v50 = vadd.f32 %v2345_v18, %v2331_v17  ;;  %v2380_v59 = vpack.c.bf16 %v5027_v28, %v4015_v54  ;;  %v3967_v41 = vld [vmem:[#allocation6 + $0x2d0] ss:$8 sps:$4 sm:$0xff]   ;;  %v3975_v0 = vld [vmem:[#allocation6 + $0x2b4] ss:$8 sps:$4 sm:$0xff]   ;;  %v3978_v47 = vld [vmem:[#allocation6 + $0x2a4] ss:$8 sps:$4 sm:$0xff]  }
 0x328   :  { %v2313_v52 = vsel %vm2297_vm5, %v2286_v15, %v2305_v19  ;;  %vm2298_vm6 = vcmp.ge.f32.partialorder %v2288_v31, 0.0  ;;  %v2306_v53 = vmul.f32 0.2, %v2288_v31  ;;  %v2290_v56 = vadd.f32 %v2289_v49, %v2237_v33  ;;  %v3973_v46 = vld [vmem:[#allocation6 + $0x2b0] ss:$8 sps:$4 sm:$0xff]  }
 0x329   :  { %v2333_v61 = vmul.f32 %v2325_v51, %v2313_v52  ;;  %v2381_v57 = vpack.c.bf16 %v2351_v50, %v4015_v54  ;;  %v2352_v63 = vadd.f32 %v2341_v32, %v2332_v23  ;;  %v3976_v16 = vld [vmem:[#allocation6 + $0x2a0] ss:$8 sps:$4 sm:$0xff]   ;;  %v3981_v15 = vld [vmem:[#allocation6 + $0x294] ss:$8 sps:$4 sm:$0xff]   ;;  %v3979_v33 = vld [vmem:[#allocation6 + $0x290] ss:$8 sps:$4 sm:$0xff]  }
 0x32a   :  { %v2314_v2 = vsel %vm2298_vm6, %v2288_v31, %v2306_v53  ;;  %vm2299_vm7 = vcmp.ge.f32.partialorder %v2290_v56, 0.0  ;;  %v2307_v48 = vmul.f32 0.2, %v2290_v56  ;;  %v3982_v17 = vld [vmem:[#allocation6 + $0x280] ss:$8 sps:$4 sm:$0xff]  }
 0x32b   :  { %v2334_v55 = vmul.f32 %v2321_v44, %v2314_v2  ;;  %3006 = vmatprep.mubr.bf16.mxu1 %v2381_v57  ;;  %v2353_v8 = vadd.f32 %v2345_v18, %v2333_v61  ;;  %v2382_v54 = vpack.c.bf16 %v2352_v63, %v2348_v9  ;;  %v2482_v3 = vld [vmem:[%s5077_s12] sm:$0x3] }
 0x32c   :  { %v2315_v10 = vsel %vm2299_vm7, %v2290_v56, %v2307_v48  ;;  %3007 = vmatmul.mubr.bf16.vlgmr.msra.gmra.mxu1 %v2380_v59  ;;  %v2487_v31 = vrot.slane %v2482_v3, %v4389_v30  ;;  %v2491_v23 = vrot.slane %v2482_v3, %v4387_v29  ;;  %v3115_v2 = vld [vmem:[%s5078_s13] sm:$0x3] }
 0x32d   :  { %v5033_v13 = vadd.f32 %v2341_v32, %v2334_v55  ;;  %v2335_v38 = vmul.f32 %v2325_v51, %v2315_v10  ;;  %3061 = vmatpush1.bf16.msra.mxu1 %v3934_v58  ;;  %v2383_v14 = vpack.c.bf16 %v2353_v8, %v2349_v6  ;;  %v3960_v32 = vld [vmem:[#allocation6 + $0x204] ss:$8 sps:$4 sm:$0xff]   ;;  %v3958_v51 = vld [vmem:[#allocation6 + $0x200] ss:$8 sps:$4 sm:$0xff]   ;;  %v3120_v10 = vrot.slane %v3115_v2, %v4389_v30 }
 0x32e   :  { %3062 = vmatprep.subr.bf16.mxu1 %v3942_v4 }
 0x32f   :  { %3049 = vmatprep.mubr.bf16.mxu0 %v2383_v14  ;;  %v2355_v60 = vadd.f32 %v2345_v18, %v2335_v38  ;;  %v2384_v44 = vpack.c.bf16 %v5033_v13, %v5027_v28  ;;  %v3984_v28 = vld [vmem:[#allocation6 + $0x284] ss:$8 sps:$4 sm:$0xff]   ;;  %v3124_v13 = vrot.slane %v3115_v2, %v4387_v29 }
 0x330   :  { %3050 = vmatmul.mubr.bf16.vlgmr.msra.gmra.mxu0 %v2382_v54 }
 0x331   :  { %3063 = vmatpush1.bf16.msra.mxu1 %v3940_v25  ;;  %v2385_v21 = vpack.c.bf16 %v2355_v60, %v2351_v50 }
 0x332   :  { %3064 = vmatprep.subr.bf16.mxu1 %v3945_v20  ;;  %v3131_v20 = vld [vmem:[%s5079_s14] sm:$0x3] }
 0x333   :  { %3092 = vmatprep.mubr.bf16.mxu1 %v2385_v21 }
 0x335   :  { %3065 = vmatpush1.bf16.msra.mxu1 %v3943_v43 }
 0x336   :  { %3066 = vmatprep.subr.bf16.mxu1 %v3948_v34  ;;  %v3514_v34 = vld [vmem:[%s5080_s15 + $0x1] ss:$2 sm:$0x3] }
 0x339   :  { %3067 = vmatpush1.bf16.msra.mxu1 %v3946_v22 }
 0x33a   :  { %3068 = vmatprep.subr.bf16.mxu1 %v3951_v24 }
 0x33d   :  { %3069 = vmatpush1.bf16.msra.mxu1 %v3949_v26  ;;  %v3136_v26 = vrot.slane %v3131_v20, %v4389_v30 }
 0x33e   :  { %3070 = vmatprep.subr.bf16.mxu1 %v3954_v7  ;;  %v3140_v7 = vrot.slane %v3131_v20, %v4387_v29 }
 0x341   :  { %3071 = vmatpush1.bf16.msra.mxu1 %v3952_v11  ;;  %v3147_v11 = vld [vmem:[%s5080_s15] ss:$2 sm:$0x3] }
 0x342   :  { %3072 = vmatprep.subr.bf16.mxu1 %v3957_v5 }
 0x345   :  { %3073 = vmatpush1.bf16.msra.mxu1 %v3955_v27 }
 0x346   :  { %3074 = vmatprep.subr.bf16.mxu1 %v3960_v32 }
 0x349   :  { %3075 = vmatpush1.bf16.msra.mxu1 %v3958_v51  ;;  %v3167_v51 = vrot.slane %v3514_v34, %v4389_v30 }
 0x34a   :  { %3076 = vmatprep.subr.bf16.mxu1 %v3963_v12 }
 0x34d   :  { %3077 = vmatpush2.bf16.msra.mxu1 %v3961_v62  ;;  %v3152_v62 = vrot.slane %v3147_v11, %v4389_v30 }
 0x34e   :  { %3078 = vmatprep.subr.bf16.mxu1 %v3966_v36  ;;  %v3156_v36 = vrot.slane %v3147_v11, %v4387_v29 }
 0x351   :  { %3079 = vmatpush2.bf16.msra.mxu1 %v3964_v37  ;;  %v3171_v37 = vrot.slane %v3514_v34, %v4387_v29 }
 0x352   :  { %3080 = vmatprep.subr.bf16.mxu1 %v3969_v39 }
 0x355   :  { %3081 = vmatpush2.bf16.msra.mxu1 %v3967_v41 }
 0x356   :  { %3082 = vmatprep.subr.bf16.mxu1 %v3972_v42 }
 0x359   :  { %3083 = vmatpush2.bf16.msra.mxu1 %v3970_v45 }
 0x35a   :  { %3084 = vmatprep.subr.bf16.mxu1 %v3975_v0 }
 0x35d   :  { %3085 = vmatpush2.bf16.msra.mxu1 %v3973_v46 }
 0x35e   :  { %3086 = vmatprep.subr.bf16.mxu1 %v3978_v47 }
 0x361   :  { %3087 = vmatpush2.bf16.msra.mxu1 %v3976_v16 }
 0x362   :  { %3088 = vmatprep.subr.bf16.mxu1 %v3981_v15 }
 0x365   :  { %3089 = vmatpush2.bf16.msra.mxu1 %v3979_v33 }
 0x366   :  { %3090 = vmatprep.subr.bf16.mxu1 %v3984_v28 }
 0x369   :  { %3091 = vmatpush2.bf16.msra.mxu1 %v3982_v17 }
 0x36c   :  { %3093 = vmatmul.mubr.bf16.vlgmr.msra.gmra.mxu1 %v2384_v44 }
 0x3ec   :  { %v3008_v40 = vpop.f32.mrf.mxu1 }
 0x3ed   :  { %v3009_v49 = vadd.f32 %v3008_v40, %v2487_v31  ;;  %v3515_v40 = vld [vmem:[#allocation5] ss:$0 sm:$0xff] }
 0x3ee   :  { %v3010_v19 = vpop.f32.mrf.mxu1 }
 0x3ef   :  { %v3011_v53 = vadd.f32 %v3010_v19, %v2491_v23 }
 0x3f0   :  { %v3051_v18 = vpop.f32.mrf.mxu0  ;;  %v3012_v1 = vpop.f32.mrf.mxu1 }
 0x3f1   :  { %v3052_v56 = vadd.f32 %v3051_v18, %v3009_v49  ;;  %v3013_v61 = vadd.f32 %v3012_v1, %v2487_v31 }
 0x3f2   :  { %v3053_v35 = vpop.f32.mrf.mxu0  ;;  %v3014_v52 = vpop.f32.mrf.mxu1 }
 0x3f3   :  { %v3054_v57 = vadd.f32 %v3053_v35, %v3011_v53  ;;  %v3015_v48 = vadd.f32 %v3014_v52, %v2491_v23 }
 0x3f4   :  { %v3055_v50 = vpop.f32.mrf.mxu0 }
 0x3f5   :  { %v3056_v55 = vadd.f32 %v3055_v50, %v3013_v61 }
 0x3f6   :  { %v3057_v58 = vpop.f32.mrf.mxu0 }
 0x3f7   :  { %v3058_v9 = vadd.f32 %v3057_v58, %v3015_v48 }
 0x42c   :  { %v3094_v59 = vpop.f32.mrf.mxu1 }
 0x42d   :  { %v3095_v63 = vadd.f32 %v3094_v59, %v3052_v56 }
 0x42e   :  { %v3096_v4 = vpop.f32.mrf.mxu1 }
 0x42f   :  { %vm3103_vm8 = vcmp.ge.f32.partialorder %v3095_v63, 0.0  ;;  %v3107_v6 = vmul.f32 0.2, %v3095_v63  ;;  %v3097_v8 = vadd.f32 %v3096_v4, %v3054_v57 }
 0x430   :  { %v3098_v38 = vpop.f32.mrf.mxu1 }
 0x431   :  { %v3111_v14 = vsel %vm3103_vm8, %v3095_v63, %v3107_v6  ;;  %vm3104_vm9 = vcmp.ge.f32.partialorder %v3097_v8, 0.0  ;;  %v3108_v25 = vmul.f32 0.2, %v3097_v8  ;;  %v3099_v54 = vadd.f32 %v3098_v38, %v3056_v55 }
 0x432   :  { %v3100_v60 = vpop.f32.mrf.mxu1  ;;  %v3127_v22 = vmul.f32 %v3120_v10, %v3111_v14 }
 0x433   :  { %v3112_v44 = vsel %vm3104_vm9, %v3097_v8, %v3108_v25  ;;  %vm3105_vm10 = vcmp.ge.f32.partialorder %v3099_v54, 0.0  ;;  %v3109_v43 = vmul.f32 0.2, %v3099_v54  ;;  %v3101_v21 = vadd.f32 %v3100_v60, %v3058_v9 }
 0x434   :  { %v3128_v24 = vmul.f32 %v3124_v13, %v3112_v44  ;;  %v3143_v41 = vadd.f32 %v3136_v26, %v3127_v22 }
 0x435   :  { %v3113_v5 = vsel %vm3105_vm10, %v3099_v54, %v3109_v43  ;;  %vm3106_vm11 = vcmp.ge.f32.partialorder %v3101_v21, 0.0  ;;  %v3110_v27 = vmul.f32 0.2, %v3101_v21 }
 0x436   :  { %v3129_v32 = vmul.f32 %v3120_v10, %v3113_v5  ;;  %v3144_v42 = vadd.f32 %v3140_v7, %v3128_v24  ;;  %v3159_v47 = vmul.f32 %v3152_v62, %v3143_v41 }
 0x437   :  { %v3114_v12 = vsel %vm3106_vm11, %v3101_v21, %v3110_v27 }
 0x438   :  { %v3130_v39 = vmul.f32 %v3124_v13, %v3114_v12  ;;  %v3145_v45 = vadd.f32 %v3136_v26, %v3129_v32  ;;  %v3160_v16 = vmul.f32 %v3156_v36, %v3144_v42 }
 0x43a   :  { %v3146_v0 = vadd.f32 %v3140_v7, %v3130_v39  ;;  %v3174_v46 = vmul.f32 %v3167_v51, %v3145_v45 }
 0x43c   :  { %v3175_v15 = vmul.f32 %v3171_v37, %v3146_v0  ;;  %v3176_v33 = vadd.f32 %v3174_v46, %v3159_v47 }
 0x43e   :  { %v3177_v28 = vadd.f32 %v3175_v15, %v3160_v16 }
 0x440   :  { %v3178_v17 = vadd.f32 %v3177_v28, %v3176_v33 }
 0x442   :  { %3179 = vadd.xlane.f32.xlu0 %v3178_v17 }
 0x4cb   :  { %v3180_v18 = vpop.xlane.xlu0 %3179 }
 0x4cc   :  { %v3188_v30 = vadd.f32 %v3515_v40, %v3180_v18 }
 0x4ce   :  { %v3189_v3 = vsub.f32 0.0, %v3188_v30 }
 0x4d0   :  { %v3190_v19 = vmul.f32 1.442695, %v3189_v3 }
 0x4d2   :  { %3985 = vpow2.f32 %v3190_v19 }
 0x4df   :  { %v3986_v29 = vpop.eup %3985 }
 0x4e0   :  { %v3192_v31 = vadd.f32 1.0, %v3986_v29 }
 0x4e2   :  { %3987 = vrcp.f32 %v3192_v31 }
 0x4ef   :  { %v3988_v35 = vpop.eup %3987 }
 0x4f0   :  { %3196 = vst.msk [vmem:[%s5082_s17] sm:$0xff] %vm3195_vm12, %v3988_v35 }
 0x4f1   :  { %3201 = vsyncpa [#allocation7], 1 }

</bundles_post_ra>
